<compile_context>
chip_gen: v7x
topology: tpu7x:2x2x1
jax: 0.10.0
libtpu: 0.0.40
codegen_flags: <defaults>
</compile_context>

<pallas_src>
import functools

import jax
import jax.numpy as jnp
from jax.experimental import pallas as pl
from jax.experimental.pallas import tpu as pltpu

LN_EPS = 1e-5  # torch.nn.LayerNorm default


def ff_kernel(x_ref, g_ref, bta_ref, w0_ref, b0_ref, w1_ref, b1_ref, o_ref,
              xn_ref, acc_ref, *, res_factor):
    j = pl.program_id(1)
    nj = pl.num_programs(1)

    # ---- per-row-tile init: LayerNorm (f32) once, zero the accumulator ----
    @pl.when(j == 0)
    def _():
        x = x_ref[...].astype(jnp.float32)                       # (tm, idim)
        mean = jnp.mean(x, axis=-1, keepdims=True)
        cent = x - mean
        var = jnp.mean(cent * cent, axis=-1, keepdims=True)
        xn = cent * jax.lax.rsqrt(var + LN_EPS)
        xn = xn * g_ref[...] + bta_ref[...]
        xn_ref[...] = xn.astype(xn_ref.dtype)                    # bf16 for MXU
        acc_ref[...] = jnp.zeros_like(acc_ref)

    # ---- hidden chunk j: FC0 + SiLU + partial FC1 (bf16 matmuls, f32 accumulate) ----
    h = jnp.dot(xn_ref[...], w0_ref[...],
                preferred_element_type=jnp.float32)              # (tm, th) f32
    h = h + b0_ref[...]
    h = h * jax.nn.sigmoid(h)                                    # SiLU in f32 (EUP)
    acc_ref[...] += jnp.dot(h.astype(w1_ref.dtype), w1_ref[...],
                            preferred_element_type=jnp.float32)  # (tm, idim) f32

    # ---- finalize: bias + residual with the original f32 x ----
    @pl.when(j == nj - 1)
    def _():
        x = x_ref[...].astype(jnp.float32)
        y = acc_ref[...] + b1_ref[...]
        o_ref[...] = (x + res_factor * y).astype(o_ref.dtype)


def ff_module(x, ln_g, ln_b, w0, b0, w1, b1, *, res_factor=0.5, tm=256, th=None):
    """x: (..., idim).  w0: (idim, 4*idim), w1: (4*idim, idim) (x @ W layout).

    tm: row tile (multiple of 8; 128-512 recommended, sweep vs VMEM).
    th: hidden-chunk size (None -> full hidden resident; else multiple of 128
        dividing hidden -- use for very large idim / v7x VMEM budgets).
    """
    orig_shape = x.shape
    idim = orig_shape[-1]
    hidden = w0.shape[1]
    if th is None:
        th = hidden
    assert tm % 8 == 0
    assert hidden % th == 0 and (th == hidden or th % 128 == 0)
    n_chunks = hidden // th

    xr = x.reshape(-1, idim)
    M = xr.shape[0]
    n_row_tiles = pl.cdiv(M, tm)
    M_pad = n_row_tiles * tm
    if M_pad != M:                       # pad rows so any batch*seq works with big tm
        xr = jnp.pad(xr, ((0, M_pad - M), (0, 0)))

    # Small params stay f32 (tiny); weights go bf16 for MXU rate + halved DMA/VMEM.
    ln_g2 = ln_g.reshape(1, idim).astype(jnp.float32)
    ln_b2 = ln_b.reshape(1, idim).astype(jnp.float32)
    b0_2 = b0.reshape(1, hidden).astype(jnp.float32)
    b1_2 = b1.reshape(1, idim).astype(jnp.float32)
    w0_bf = w0.astype(jnp.bfloat16)
    w1_bf = w1.astype(jnp.bfloat16)

    kernel = functools.partial(ff_kernel, res_factor=res_factor)

    cost = pl.CostEstimate(
        flops=int(4 * M_pad * idim * hidden),                 # two matmuls
        transcendentals=int(M_pad * hidden),                  # sigmoid
        bytes_accessed=int(2 * M_pad * idim * x.dtype.itemsize
                           + 2 * (w0_bf.size + w1_bf.size)),  # acts + bf16 weights
    )

    out = pl.pallas_call(
        kernel,
        out_shape=jax.ShapeDtypeStruct((M_pad, idim), x.dtype),
        grid_spec=pltpu.PrefetchScalarGridSpec(
            num_scalar_prefetch=0,
            grid=(n_row_tiles, n_chunks),                        # hidden (reduction) last
            in_specs=[
                pl.BlockSpec((tm, idim), lambda i, j: (i, 0)),   # x rows (const over j)
                pl.BlockSpec((1, idim), lambda i, j: (0, 0)),    # ln gamma
                pl.BlockSpec((1, idim), lambda i, j: (0, 0)),    # ln beta
                pl.BlockSpec((idim, th), lambda i, j: (0, j)),   # W0 chunk (bf16)
                pl.BlockSpec((1, th), lambda i, j: (0, j)),      # b0 chunk
                pl.BlockSpec((th, idim), lambda i, j: (j, 0)),   # W1 chunk (bf16)
                pl.BlockSpec((1, idim), lambda i, j: (0, 0)),    # b1
            ],
            out_specs=pl.BlockSpec((tm, idim), lambda i, j: (i, 0)),
            scratch_shapes=[
                pltpu.VMEM((tm, idim), jnp.bfloat16),            # LayerNorm output
                pltpu.VMEM((tm, idim), jnp.float32),             # FC1 accumulator
            ],
        ),
        compiler_params=pltpu.CompilerParams(
            # row axis parallel (megacore on v7x), hidden axis is a reduction
            dimension_semantics=("parallel", "arbitrary"),
            # above the 16/32 MiB defaults, below v7x's 64 MiB physical; sweep for
            # large idim / tm configs
            vmem_limit_bytes=48 * 1024 * 1024,
        ),
        cost_estimate=cost,
    )(xr, ln_g2, ln_b2, w0_bf, b0_2, w1_bf, b1_2)

    return out[:M].reshape(orig_shape)


def init_params(key, idim):
    """Deterministic synthetic params matching FFModule(idim) shapes.

    Weights are round-tripped through bf16 so kernel (bf16) and reference (f32)
    see identical weight values; remaining mismatch is only the kernel's bf16
    activation rounding.
    """
    hidden = 4 * idim
    k0, k1, k2, k3 = jax.random.split(key, 4)
    ln_g = jnp.ones((idim,), jnp.float32)
    ln_b = jnp.zeros((idim,), jnp.float32)
    w0 = (jax.random.normal(k0, (idim, hidden), jnp.float32) * 0.05
          ).astype(jnp.bfloat16).astype(jnp.float32)
    b0 = jax.random.normal(k1, (hidden,), jnp.float32) * 0.05
    w1 = (jax.random.normal(k2, (hidden, idim), jnp.float32) * 0.05
          ).astype(jnp.bfloat16).astype(jnp.float32)
    b1 = jax.random.normal(k3, (idim,), jnp.float32) * 0.05
    return ln_g, ln_b, w0, b0, w1, b1


def ff_module_ref(x, ln_g, ln_b, w0, b0, w1, b1, *, res_factor=0.5):
    """Pure-JAX f32 reference for validation."""
    mean = jnp.mean(x, axis=-1, keepdims=True)
    var = jnp.mean((x - mean) ** 2, axis=-1, keepdims=True)
    o = (x - mean) / jnp.sqrt(var + LN_EPS) * ln_g + ln_b
    o = o @ w0 + b0
    o = o * jax.nn.sigmoid(o)
    o = o @ w1 + b1
    return x + res_factor * o


if __name__ == "__main__":
    idim = 128                      # lane-dense last dim (multiple of 128)
    batch, seq = 2, 64              # M = 128 rows
    key = jax.random.PRNGKey(0)
    kx, kp = jax.random.split(key)

    x = jax.random.normal(kx, (batch, seq, idim), jnp.float32)
    params = init_params(kp, idim)

    # Path 1: full hidden resident (single chunk), tm = 128.
    out = jax.block_until_ready(ff_module(x, *params, res_factor=0.5, tm=128, th=None))
    ref = ff_module_ref(x, *params, res_factor=0.5)
    assert out.shape == x.shape
    err = float(jnp.max(jnp.abs(out - ref)))
    assert err < 2e-2, f"max err {err}"

    # Path 2: hidden-chunk accumulator (2 chunks) + non-divisible row count (padding).
    x2 = x[:, :50, :]               # M = 100, not a multiple of tm
    out2 = jax.block_until_ready(ff_module(x2, *params, res_factor=0.5, tm=128, th=256))
    ref2 = ff_module_ref(x2, *params, res_factor=0.5)
    assert out2.shape == x2.shape
    err2 = float(jnp.max(jnp.abs(out2 - ref2)))
    assert err2 < 2e-2, f"max err {err2}"

    print("KERNEL_OK")
</pallas_src>

<mosaic_0001>
module attributes {stable_mosaic.version = 11 : i64} {
  func.func @ff_kernel(%arg0: i32, %arg1: i32, %arg2: memref<128x128xf32, #tpu.memory_space<vmem>>, %arg3: memref<1x128xf32, #tpu.memory_space<vmem>>, %arg4: memref<1x128xf32, #tpu.memory_space<vmem>>, %arg5: memref<128x512xbf16, #tpu.memory_space<vmem>>, %arg6: memref<1x512xf32, #tpu.memory_space<vmem>>, %arg7: memref<512x128xbf16, #tpu.memory_space<vmem>>, %arg8: memref<1x128xf32, #tpu.memory_space<vmem>>, %arg9: memref<128x128xf32, #tpu.memory_space<vmem>>, %arg10: memref<128x128xbf16, #tpu.memory_space<vmem>>, %arg11: memref<128x128xf32, #tpu.memory_space<vmem>>) attributes {dimension_semantics = [#tpu.dimension_semantics<parallel>, #tpu.dimension_semantics<arbitrary>], iteration_bounds = array<i64: 1, 1>, scalar_prefetch = 0 : i64, scratch_operands = 2 : i64, tpu.core_type = #tpu.core_type<tc>, window_params = [{transform_indices = @transform_0, window_bounds = array<i64: 128, 128>}, {pipeline_mode = #tpu.pipeline_mode<synchronous>, transform_indices = @transform_1, window_bounds = array<i64: 1, 128>}, {pipeline_mode = #tpu.pipeline_mode<synchronous>, transform_indices = @transform_2, window_bounds = array<i64: 1, 128>}, {transform_indices = @transform_3, window_bounds = array<i64: 128, 512>}, {transform_indices = @transform_4, window_bounds = array<i64: 1, 512>}, {transform_indices = @transform_5, window_bounds = array<i64: 512, 128>}, {pipeline_mode = #tpu.pipeline_mode<synchronous>, transform_indices = @transform_6, window_bounds = array<i64: 1, 128>}, {transform_indices = @transform_7, window_bounds = array<i64: 128, 128>}]} {
    %c0_i32 = arith.constant 0 : i32
    %0 = arith.cmpi eq, %arg1, %c0_i32 : i32
    %1 = arith.extui %0 : i1 to i32
    %c0_i32_0 = arith.constant 0 : i32
    %2 = arith.cmpi ne, %1, %c0_i32_0 : i32
    scf.if %2 {
      %c0_16 = arith.constant 0 : index
      %c0_17 = arith.constant 0 : index
      %24 = vector.load %arg2[%c0_16, %c0_17] : memref<128x128xf32, #tpu.memory_space<vmem>>, vector<128x128xf32>
      %cst_18 = arith.constant dense<0.000000e+00> : vector<128xf32>
      %25 = vector.multi_reduction <add>, %24, %cst_18 [1] : vector<128x128xf32> to vector<128xf32>
      %26 = vector.shape_cast %25 : vector<128xf32> to vector<128x1xf32>
      %cst_19 = arith.constant 1.280000e+02 : f32
      %27 = vector.broadcast %cst_19 : f32 to vector<128x1xf32>
      %28 = arith.divf %26, %27 : vector<128x1xf32>
      %29 = vector.broadcast %28 : vector<128x1xf32> to vector<128x128xf32>
      %30 = arith.subf %24, %29 : vector<128x128xf32>
      %31 = arith.mulf %30, %30 : vector<128x128xf32>
      %cst_20 = arith.constant dense<0.000000e+00> : vector<128xf32>
      %32 = vector.multi_reduction <add>, %31, %cst_20 [1] : vector<128x128xf32> to vector<128xf32>
      %33 = vector.shape_cast %32 : vector<128xf32> to vector<128x1xf32>
      %cst_21 = arith.constant 1.280000e+02 : f32
      %34 = vector.broadcast %cst_21 : f32 to vector<128x1xf32>
      %35 = arith.divf %33, %34 : vector<128x1xf32>
      %cst_22 = arith.constant 9.99999974E-6 : f32
      %36 = vector.broadcast %cst_22 : f32 to vector<128x1xf32>
      %37 = arith.addf %35, %36 : vector<128x1xf32>
      %38 = math.rsqrt %37 : vector<128x1xf32>
      %39 = vector.broadcast %38 : vector<128x1xf32> to vector<128x128xf32>
      %40 = arith.mulf %30, %39 : vector<128x128xf32>
      %c0_23 = arith.constant 0 : index
      %c0_24 = arith.constant 0 : index
      %41 = vector.load %arg3[%c0_23, %c0_24] : memref<1x128xf32, #tpu.memory_space<vmem>>, vector<1x128xf32>
      %42 = vector.broadcast %41 : vector<1x128xf32> to vector<128x128xf32>
      %43 = arith.mulf %40, %42 : vector<128x128xf32>
      %c0_25 = arith.constant 0 : index
      %c0_26 = arith.constant 0 : index
      %44 = vector.load %arg4[%c0_25, %c0_26] : memref<1x128xf32, #tpu.memory_space<vmem>>, vector<1x128xf32>
      %45 = vector.broadcast %44 : vector<1x128xf32> to vector<128x128xf32>
      %46 = arith.addf %43, %45 : vector<128x128xf32>
      %47 = arith.truncf %46 : vector<128x128xf32> to vector<128x128xbf16>
      %c0_27 = arith.constant 0 : index
      %c0_28 = arith.constant 0 : index
      %48 = vector.load %arg10[%c0_27, %c0_28] : memref<128x128xbf16, #tpu.memory_space<vmem>>, vector<128x128xbf16>
      tpu.vector_store %arg10[%c0_27, %c0_28], %47 {strides = array<i32>} : memref<128x128xbf16, #tpu.memory_space<vmem>>, vector<128x128xbf16>,
      %cst_29 = arith.constant 0.000000e+00 : f32
      %49 = vector.broadcast %cst_29 : f32 to vector<128x128xf32>
      %c0_30 = arith.constant 0 : index
      %c0_31 = arith.constant 0 : index
      %50 = vector.load %arg11[%c0_30, %c0_31] : memref<128x128xf32, #tpu.memory_space<vmem>>, vector<128x128xf32>
      tpu.vector_store %arg11[%c0_30, %c0_31], %49 {strides = array<i32>} : memref<128x128xf32, #tpu.memory_space<vmem>>, vector<128x128xf32>,
    } else {
    }
    %c0 = arith.constant 0 : index
    %c0_1 = arith.constant 0 : index
    %3 = vector.load %arg10[%c0, %c0_1] : memref<128x128xbf16, #tpu.memory_space<vmem>>, vector<128x128xbf16>
    %c0_2 = arith.constant 0 : index
    %c0_3 = arith.constant 0 : index
    %4 = vector.load %arg5[%c0_2, %c0_3] : memref<128x512xbf16, #tpu.memory_space<vmem>>, vector<128x512xbf16>
    %cst = arith.constant dense<0.000000e+00> : vector<128x512xf32>
    %5 = tpu.matmul %3, %4, %cst {dimension_numbers = #tpu.dot_dimension_numbers<[1], [0], [0], [1], [0, 0, 1, 1], [], []>} : vector<128x128xbf16>, vector<128x512xbf16>, vector<128x512xf32> -> vector<128x512xf32>
    %c0_4 = arith.constant 0 : index
    %c0_5 = arith.constant 0 : index
    %6 = vector.load %arg6[%c0_4, %c0_5] : memref<1x512xf32, #tpu.memory_space<vmem>>, vector<1x512xf32>
    %7 = vector.broadcast %6 : vector<1x512xf32> to vector<128x512xf32>
    %8 = arith.addf %5, %7 : vector<128x512xf32>
    %9 = arith.negf %8 : vector<128x512xf32>
    %10 = math.exp %9 : vector<128x512xf32>
    %cst_6 = arith.constant 1.000000e+00 : f32
    %11 = vector.broadcast %cst_6 : f32 to vector<128x512xf32>
    %12 = arith.addf %11, %10 : vector<128x512xf32>
    %13 = arith.divf %11, %12 : vector<128x512xf32>
    %14 = arith.mulf %8, %13 : vector<128x512xf32>
    %c0_7 = arith.constant 0 : index
    %c0_8 = arith.constant 0 : index
    %15 = vector.load %arg11[%c0_7, %c0_8] : memref<128x128xf32, #tpu.memory_space<vmem>>, vector<128x128xf32>
    %16 = arith.truncf %14 : vector<128x512xf32> to vector<128x512xbf16>
    %c0_9 = arith.constant 0 : index
    %c0_10 = arith.constant 0 : index
    %17 = vector.load %arg7[%c0_9, %c0_10] : memref<512x128xbf16, #tpu.memory_space<vmem>>, vector<512x128xbf16>
    %cst_11 = arith.constant dense<0.000000e+00> : vector<128x128xf32>
    %18 = tpu.matmul %16, %17, %cst_11 {dimension_numbers = #tpu.dot_dimension_numbers<[1], [0], [0], [1], [0, 0, 1, 1], [], []>} : vector<128x512xbf16>, vector<512x128xbf16>, vector<128x128xf32> -> vector<128x128xf32>
    %19 = arith.addf %15, %18 : vector<128x128xf32>
    %c0_12 = arith.constant 0 : index
    %c0_13 = arith.constant 0 : index
    %20 = vector.load %arg11[%c0_12, %c0_13] : memref<128x128xf32, #tpu.memory_space<vmem>>, vector<128x128xf32>
    tpu.vector_store %arg11[%c0_12, %c0_13], %19 {strides = array<i32>} : memref<128x128xf32, #tpu.memory_space<vmem>>, vector<128x128xf32>,
    %c0_i32_14 = arith.constant 0 : i32
    %21 = arith.cmpi eq, %arg1, %c0_i32_14 : i32
    %22 = arith.extui %21 : i1 to i32
    %c0_i32_15 = arith.constant 0 : i32
    %23 = arith.cmpi ne, %22, %c0_i32_15 : i32
    scf.if %23 {
      %c0_16 = arith.constant 0 : index
      %c0_17 = arith.constant 0 : index
      %24 = vector.load %arg2[%c0_16, %c0_17] : memref<128x128xf32, #tpu.memory_space<vmem>>, vector<128x128xf32>
      %c0_18 = arith.constant 0 : index
      %c0_19 = arith.constant 0 : index
      %25 = vector.load %arg11[%c0_18, %c0_19] : memref<128x128xf32, #tpu.memory_space<vmem>>, vector<128x128xf32>
      %c0_20 = arith.constant 0 : index
      %c0_21 = arith.constant 0 : index
      %26 = vector.load %arg8[%c0_20, %c0_21] : memref<1x128xf32, #tpu.memory_space<vmem>>, vector<1x128xf32>
      %27 = vector.broadcast %26 : vector<1x128xf32> to vector<128x128xf32>
      %28 = arith.addf %25, %27 : vector<128x128xf32>
      %cst_22 = arith.constant 5.000000e-01 : f32
      %29 = vector.broadcast %cst_22 : f32 to vector<128x128xf32>
      %30 = arith.mulf %29, %28 : vector<128x128xf32>
      %31 = arith.addf %24, %30 : vector<128x128xf32>
      %c0_23 = arith.constant 0 : index
      %c0_24 = arith.constant 0 : index
      %32 = vector.load %arg9[%c0_23, %c0_24] : memref<128x128xf32, #tpu.memory_space<vmem>>, vector<128x128xf32>
      tpu.vector_store %arg9[%c0_23, %c0_24], %31 {strides = array<i32>} : memref<128x128xf32, #tpu.memory_space<vmem>>, vector<128x128xf32>,
    } else {
    }
    return
  }
  func.func @transform_0(%arg0: i32, %arg1: i32) -> (i32, i32) {
    %c0_i32 = arith.constant 0 : i32
    %c0_i32_0 = arith.constant 0 : i32
    return %arg0, %c0_i32 : i32, i32
  }
  func.func @transform_1(%arg0: i32, %arg1: i32) -> (i32, i32) {
    %c0_i32 = arith.constant 0 : i32
    %c0_i32_0 = arith.constant 0 : i32
    %c0_i32_1 = arith.constant 0 : i32
    return %c0_i32, %c0_i32_0 : i32, i32
  }
  func.func @transform_2(%arg0: i32, %arg1: i32) -> (i32, i32) {
    %c0_i32 = arith.constant 0 : i32
    %c0_i32_0 = arith.constant 0 : i32
    %c0_i32_1 = arith.constant 0 : i32
    return %c0_i32, %c0_i32_0 : i32, i32
  }
  func.func @transform_3(%arg0: i32, %arg1: i32) -> (i32, i32) {
    %c0_i32 = arith.constant 0 : i32
    %c0_i32_0 = arith.constant 0 : i32
    return %c0_i32, %arg1 : i32, i32
  }
  func.func @transform_4(%arg0: i32, %arg1: i32) -> (i32, i32) {
    %c0_i32 = arith.constant 0 : i32
    %c0_i32_0 = arith.constant 0 : i32
    return %c0_i32, %arg1 : i32, i32
  }
  func.func @transform_5(%arg0: i32, %arg1: i32) -> (i32, i32) {
    %c0_i32 = arith.constant 0 : i32
    %c0_i32_0 = arith.constant 0 : i32
    return %arg1, %c0_i32 : i32, i32
  }
  func.func @transform_6(%arg0: i32, %arg1: i32) -> (i32, i32) {
    %c0_i32 = arith.constant 0 : i32
    %c0_i32_0 = arith.constant 0 : i32
    %c0_i32_1 = arith.constant 0 : i32
    return %c0_i32, %c0_i32_0 : i32, i32
  }
  func.func @transform_7(%arg0: i32, %arg1: i32) -> (i32, i32) {
    %c0_i32 = arith.constant 0 : i32
    %c0_i32_0 = arith.constant 0 : i32
    return %arg0, %c0_i32 : i32, i32
  }
}

</mosaic_0001>

<bundles_post_ra>
// kernel: tpu_custom_call.1
= control target key start
LH: loop header
LB: loop body
LE: loop exit
PB: predicated region body
PF: predicated region fallthrough
CT: control target
= control target key end

     0   :  { %12 = vsyncpa [#allocation5], 0  ;;  %s3417_s0 = inlined_call_operand.hbm [shape: f32[128,128], index: 0, kind: input, shape index: {}]   ;;  %s3418_s1 = inlined_call_operand.vmem [shape: f32[1,128], index: 1, kind: input, shape index: {}]   ;;  %s3419_s2 = inlined_call_operand.vmem [shape: f32[1,128], index: 2, kind: input, shape index: {}]   ;;  %s3420_s3 = inlined_call_operand.hbm [shape: bf16[128,512], index: 3, kind: input, shape index: {}]   ;;  %s3421_s4 = inlined_call_operand.vmem [shape: f32[1,512], index: 4, kind: input, shape index: {}]   ;;  %s3422_s5 = inlined_call_operand.hbm [shape: bf16[512,128], index: 5, kind: input, shape index: {}]   ;;  %s3423_s6 = inlined_call_operand.vmem [shape: f32[1,128], index: 6, kind: input, shape index: {}]   ;;  %s3424_s7 = inlined_call_operand.hbm [shape: f32[128,128], index: 7, kind: output, shape index: {}]  }
   0x1   :  { %13 = vsyncpa [#allocation8], 0 }
   0x2   :  { %14 = vsyncpa [#allocation6], 0  ;;  %s2626_s24 = smov [#allocation7]   ;;  %s2532_s28 = scalar_lea.hbm %s3420_s3, 4096 }
   0x3   :  { %s36_s25 = sshll.u32 %s2626_s24, 4  ;;  %p2533_p0 = scmp.ne.s32.totalorder %s3420_s3, %s2532_s28  ;;  %s37_s25 = int_to_ptr.vmem [resolvable:$true] %s36_s25 }
   0x4   :  { %p2536_p1 = scmp.lt.u32.totalorder %s2532_s28, %s3420_s3 }
   0x6   :  { %p2538_p2 = pnand %p2536_p1, %p2533_p0 }
   0x8   :  { %2541 = shalt.err (!%p2538_p2)
}
   0x9   :  { %s2542_s10 = scalar_lea.vmem %s37_s25, 4096  ;;  %p2547_p4 = scmp.lt.s32.totalorder %s37_s25, %s37_s25 }
   0xa   :  { %p2543_p3 = scmp.ne.s32.totalorder %s37_s25, %s2542_s10  ;;  %p2548_p5 = scmp.lt.s32.totalorder %s2542_s10, %s2542_s10 }
   0xc   :  { %p2549_p6 = por %p2548_p5, %p2547_p4 }
   0xe   :  { %p2550_p7 = pnand %p2549_p6, %p2543_p3 }
  0x10   :  { %2553 = shalt.err (!%p2550_p7)
}
  0x11   :  { %s2627_s11 = smov 256   ;;  %s2628_s12 = smov 16  }
  0x12   :  { %42 = dma.hbm_to_vmem [thread:$0]  %s3420_s3, 4096, %s37_s25, [#allocation8], %s2627_s11, %s2627_s11, %s2628_s12  }
  0x13   :  { %s2629_s15 = smov [#allocation4]   ;;  %s2554_s19 = scalar_lea.hbm %s3417_s0, 2048 }
  0x14   :  { %s20_s16 = sshll.u32 %s2629_s15, 4  ;;  %p2555_p8 = scmp.ne.s32.totalorder %s3417_s0, %s2554_s19  ;;  %s21_s16 = int_to_ptr.vmem [resolvable:$true] %s20_s16 }
  0x15   :  { %p2558_p9 = scmp.lt.u32.totalorder %s2554_s19, %s3417_s0 }
  0x17   :  { %p2560_p10 = pnand %p2558_p9, %p2555_p8 }
  0x19   :  { %2563 = shalt.err (!%p2560_p10)
}
  0x1a   :  { %s2564_s24 = scalar_lea.vmem %s21_s16, 2048  ;;  %p2569_p12 = scmp.lt.s32.totalorder %s21_s16, %s21_s16 }
  0x1b   :  { %p2565_p11 = scmp.ne.s32.totalorder %s21_s16, %s2564_s24  ;;  %p2570_p13 = scmp.lt.s32.totalorder %s2564_s24, %s2564_s24 }
  0x1d   :  { %p2571_p0 = por %p2570_p13, %p2569_p12 }
  0x1f   :  { %p2572_p1 = pnand %p2571_p0, %p2565_p11 }
  0x21   :  { %2575 = shalt.err (!%p2572_p1)
}
  0x22   :  { %s2630_s3 = smov 128   ;;  %s2631_s25 = smov 8  }
  0x23   :  { %26 = dma.hbm_to_vmem [thread:$0]  %s3417_s0, 2048, %s21_s16, [#allocation5], %s2630_s3, %s2630_s3, %s2631_s25  }
  0x24   :  { %s2632_s28 = smov [#allocation9]   ;;  %s2576_s9 = scalar_lea.hbm %s3422_s5, 4096 }
  0x25   :  { %s50_s29 = sshll.u32 %s2632_s28, 4  ;;  %p2577_p2 = scmp.ne.s32.totalorder %s3422_s5, %s2576_s9  ;;  %s51_s29 = int_to_ptr.vmem [resolvable:$true] %s50_s29 }
  0x26   :  { %p2580_p3 = scmp.lt.u32.totalorder %s2576_s9, %s3422_s5 }
  0x28   :  { %p2582_p4 = pnand %p2580_p3, %p2577_p2 }
  0x2a   :  { %2585 = shalt.err (!%p2582_p4)
}
  0x2b   :  { %s2586_s14 = scalar_lea.vmem %s51_s29, 4096  ;;  %p2591_p6 = scmp.lt.s32.totalorder %s51_s29, %s51_s29 }
  0x2c   :  { %p2587_p5 = scmp.ne.s32.totalorder %s51_s29, %s2586_s14  ;;  %p2592_p7 = scmp.lt.s32.totalorder %s2586_s14, %s2586_s14 }
  0x2e   :  { %p2593_p8 = por %p2592_p7, %p2591_p6 }
  0x30   :  { %p2594_p9 = pnand %p2593_p8, %p2587_p5 }
  0x32   :  { %2597 = shalt.err (!%p2594_p9)
}
  0x33   :  { %s2633_s0 = smov 64   ;;  %s2634_s15 = smov 4  }
  0x34   :  { %56 = dma.hbm_to_vmem [thread:$0]  %s3422_s5, 4096, %s51_s29, [#allocation8], %s2633_s0, %s2633_s0, %s2634_s15  }
  0x35   :  { %2620 = dma.done.wait [#allocation5], 2048  }
  0x36   :  { %2621 = vsyncadd [#allocation5], 4294965248 }
  0x37   :  { %2622 = dma.done.wait [#allocation8], 8192  }
  0x38   :  { %2623 = vsyncadd [#allocation8], 4294959104  ;;  %v73_v0 = vld [vmem:[#allocation4] sm:$0xff]  ;;  %v75_v1 = vld [vmem:[#allocation4 + $0x10] sm:$0xff] }
  0x39   :  { %89 = vadd.xlane.f32.xlu0 %v73_v0  ;;  %93 = vadd.xlane.f32.xlu1 %v75_v1  ;;  %v74_v2 = vld [vmem:[#allocation4 + $0x8] sm:$0xff]  ;;  %v76_v3 = vld [vmem:[#allocation4 + $0x18] sm:$0xff]  ;;  %v77_v4 = vld [vmem:[#allocation4 + $0x20] sm:$0xff] }
  0x3a   :  { %v78_v5 = vld [vmem:[#allocation4 + $0x28] sm:$0xff]  ;;  %v2716_v6 = vld [vmem:[#allocation4 + $0x30] sm:$0xff]  ;;  %v2718_v7 = vld [vmem:[#allocation4 + $0x38] sm:$0xff] }
  0x3b   :  { %v2720_v8 = vld [vmem:[#allocation4 + $0x40] sm:$0xff]  ;;  %v2722_v9 = vld [vmem:[#allocation4 + $0x48] sm:$0xff]  ;;  %v2726_v10 = vld [vmem:[#allocation4 + $0x50] sm:$0xff] }
  0x3c   :  { %v2728_v11 = vld [vmem:[#allocation4 + $0x58] sm:$0xff]  ;;  %v2732_v12 = vld [vmem:[#allocation4 + $0x60] sm:$0xff]  ;;  %v2734_v13 = vld [vmem:[#allocation4 + $0x68] sm:$0xff] }
  0x3d   :  { %91 = vadd.xlane.f32.xlu0 %v74_v2  ;;  %95 = vadd.xlane.f32.xlu1 %v76_v3  ;;  %v2738_v14 = vld [vmem:[#allocation4 + $0x70] sm:$0xff]  ;;  %v2740_v15 = vld [vmem:[#allocation4 + $0x78] sm:$0xff] }
  0x3e   :  { %v2164_v16 = vld [vmem:[#allocation7 + $0x4] ss:$16 sps:$4 sm:$0xff]   ;;  %v2166_v17 = vld [vmem:[#allocation7 + $0xc] ss:$16 sps:$4 sm:$0xff]   ;;  %v2168_v18 = vld [vmem:[#allocation7] ss:$16 sps:$4 sm:$0xff]  }
  0x3f   :  { %v2169_v19 = vld [vmem:[#allocation7 + $0x8] ss:$16 sps:$4 sm:$0xff]   ;;  %v2170_v20 = vld [vmem:[#allocation7 + $0x24] ss:$16 sps:$4 sm:$0xff]   ;;  %v2172_v21 = vld [vmem:[#allocation7 + $0x2c] ss:$16 sps:$4 sm:$0xff]   ;;  %566 = vmatprep.subr.bf16.mxu0 %v2164_v16  ;;  %679 = vmatprep.subr.bf16.mxu1 %v2166_v17 }
  0x40   :  { %567 = vmatpush1.bf16.msra.mxu0 %v2168_v18  ;;  %680 = vmatpush1.bf16.msra.mxu1 %v2169_v19  ;;  %v2174_v60 = vld [vmem:[#allocation7 + $0x20] ss:$16 sps:$4 sm:$0xff]   ;;  %v2175_v61 = vld [vmem:[#allocation7 + $0x28] ss:$16 sps:$4 sm:$0xff]  }
  0x41   :  { %97 = vadd.xlane.f32.xlu0 %v77_v4  ;;  %99 = vadd.xlane.f32.xlu1 %v78_v5  ;;  %v2180_v16 = vld [vmem:[#allocation7 + $0x40] ss:$16 sps:$4 sm:$0xff]   ;;  %v2181_v17 = vld [vmem:[#allocation7 + $0x48] ss:$16 sps:$4 sm:$0xff]  }
  0x42   :  { %568 = vmatprep.subr.bf16.mxu0 %v2170_v20  ;;  %681 = vmatprep.subr.bf16.mxu1 %v2172_v21 }
  0x44   :  { %569 = vmatpush1.bf16.msra.mxu0 %v2174_v60  ;;  %682 = vmatpush1.bf16.msra.mxu1 %v2175_v61  ;;  %v2213_v60 = vld [vmem:[#allocation9 + $0xc0] sm:$0xff]  }
  0x45   :  { %101 = vadd.xlane.f32.xlu0 %v2716_v6  ;;  %103 = vadd.xlane.f32.xlu1 %v2718_v7 }
  0x49   :  { %105 = vadd.xlane.f32.xlu0 %v2720_v8  ;;  %107 = vadd.xlane.f32.xlu1 %v2722_v9 }
  0x4d   :  { %109 = vadd.xlane.f32.xlu0 %v2726_v10  ;;  %111 = vadd.xlane.f32.xlu1 %v2728_v11 }
  0x51   :  { %113 = vadd.xlane.f32.xlu0 %v2732_v12  ;;  %115 = vadd.xlane.f32.xlu1 %v2734_v13 }
  0x55   :  { %117 = vadd.xlane.f32.xlu0 %v2738_v14  ;;  %119 = vadd.xlane.f32.xlu1 %v2740_v15 }
  0xc6   :  { %v90_v22 = vpop.xlane.xlu0 %89  ;;  %v94_v23 = vpop.xlane.xlu1 %93 }
  0xc7   :  { %v122_v24 = vmul.f32 0.0078125, %v90_v22  ;;  %v124_v25 = vmul.f32 0.0078125, %v94_v23  ;;  %v2182_v22 = vld [vmem:[#allocation7 + $0x64] ss:$16 sps:$4 sm:$0xff]   ;;  %v2184_v23 = vld [vmem:[#allocation7 + $0x6c] ss:$16 sps:$4 sm:$0xff]  }
  0xc9   :  { %v2746_v26 = vsub.f32 %v73_v0, %v122_v24  ;;  %v2748_v27 = vsub.f32 %v75_v1, %v124_v25 }
  0xca   :  { %v92_v28 = vpop.xlane.xlu0 %91  ;;  %v96_v29 = vpop.xlane.xlu1 %95 }
  0xcb   :  { %v123_v30 = vmul.f32 0.0078125, %v92_v28  ;;  %v154_v31 = vmul.f32 %v2746_v26, %v2746_v26  ;;  %v125_v32 = vmul.f32 0.0078125, %v96_v29  ;;  %v156_v35 = vmul.f32 %v2748_v27, %v2748_v27  ;;  %v2186_v28 = vld [vmem:[#allocation7 + $0x60] ss:$16 sps:$4 sm:$0xff]   ;;  %v2187_v29 = vld [vmem:[#allocation7 + $0x68] ss:$16 sps:$4 sm:$0xff]  }
  0xcd   :  { %v2752_v33 = vsub.f32 %v74_v2, %v123_v30  ;;  %170 = vadd.xlane.f32.xlu0 %v154_v31  ;;  %v2754_v34 = vsub.f32 %v76_v3, %v125_v32  ;;  %v2176_v3 = vld [vmem:[#allocation7 + $0x44] ss:$16 sps:$4 sm:$0xff]  }
  0xce   :  { %v98_v36 = vpop.xlane.xlu0 %97  ;;  %v100_v37 = vpop.xlane.xlu1 %99  ;;  %570 = vmatprep.subr.bf16.mxu0 %v2176_v3 }
  0xcf   :  { %v126_v38 = vmul.f32 0.0078125, %v98_v36  ;;  %v155_v39 = vmul.f32 %v2752_v33, %v2752_v33  ;;  %v127_v40 = vmul.f32 0.0078125, %v100_v37  ;;  %v157_v43 = vmul.f32 %v2754_v34, %v2754_v34  ;;  %571 = vmatpush1.bf16.msra.mxu0 %v2180_v16  ;;  %v2188_v36 = vld [vmem:[#allocation7 + $0x84] ss:$16 sps:$4 sm:$0xff]   ;;  %v2190_v37 = vld [vmem:[#allocation7 + $0x8c] ss:$16 sps:$4 sm:$0xff]  }
  0xd0   :  { %572 = vmatprep.subr.bf16.mxu0 %v2182_v22 }
  0xd1   :  { %v2760_v41 = vsub.f32 %v77_v4, %v126_v38  ;;  %174 = vadd.xlane.f32.xlu0 %v156_v35  ;;  %172 = vadd.xlane.f32.xlu1 %v155_v39  ;;  %v2762_v42 = vsub.f32 %v78_v5, %v127_v40  ;;  %v2178_v4 = vld [vmem:[#allocation7 + $0x4c] ss:$16 sps:$4 sm:$0xff]   ;;  %v2192_v38 = vld [vmem:[#allocation7 + $0x80] ss:$16 sps:$4 sm:$0xff]   ;;  %v2193_v39 = vld [vmem:[#allocation7 + $0x88] ss:$16 sps:$4 sm:$0xff]  }
  0xd2   :  { %v102_v44 = vpop.xlane.xlu0 %101  ;;  %v104_v45 = vpop.xlane.xlu1 %103  ;;  %683 = vmatprep.subr.bf16.mxu1 %v2178_v4 }
  0xd3   :  { %v128_v46 = vmul.f32 0.0078125, %v102_v44  ;;  %v158_v47 = vmul.f32 %v2760_v41, %v2760_v41  ;;  %v129_v48 = vmul.f32 0.0078125, %v104_v45  ;;  %v159_v51 = vmul.f32 %v2762_v42, %v2762_v42  ;;  %684 = vmatpush1.bf16.msra.mxu1 %v2181_v17  ;;  %573 = vmatpush1.bf16.msra.mxu0 %v2186_v28  ;;  %v2198_v44 = vld [vmem:[#allocation7 + $0xa0] ss:$16 sps:$4 sm:$0xff]   ;;  %v2199_v45 = vld [vmem:[#allocation7 + $0xa8] ss:$16 sps:$4 sm:$0xff]  }
  0xd4   :  { %685 = vmatprep.subr.bf16.mxu1 %v2184_v23  ;;  %574 = vmatprep.subr.bf16.mxu0 %v2188_v36 }
  0xd5   :  { %v2769_v49 = vsub.f32 %v2716_v6, %v128_v46  ;;  %176 = vadd.xlane.f32.xlu1 %v157_v43  ;;  %178 = vadd.xlane.f32.xlu0 %v158_v47  ;;  %v2772_v50 = vsub.f32 %v2718_v7, %v129_v48  ;;  %v2196_v43 = vld [vmem:[#allocation7 + $0xac] ss:$16 sps:$4 sm:$0xff]   ;;  %v2200_v46 = vld [vmem:[#allocation7 + $0xc4] ss:$16 sps:$4 sm:$0xff]   ;;  %v2204_v48 = vld [vmem:[#allocation7 + $0xc0] ss:$16 sps:$4 sm:$0xff]  }
  0xd6   :  { %v106_v52 = vpop.xlane.xlu0 %105  ;;  %v108_v53 = vpop.xlane.xlu1 %107  ;;  %v2202_v47 = vld [vmem:[#allocation7 + $0xcc] ss:$16 sps:$4 sm:$0xff]  }
  0xd7   :  { %v130_v54 = vmul.f32 0.0078125, %v106_v52  ;;  %v160_v55 = vmul.f32 %v2769_v49, %v2769_v49  ;;  %v131_v56 = vmul.f32 0.0078125, %v108_v53  ;;  %v161_v59 = vmul.f32 %v2772_v50, %v2772_v50  ;;  %686 = vmatpush1.bf16.msra.mxu1 %v2187_v29  ;;  %575 = vmatpush1.bf16.msra.mxu0 %v2192_v38  ;;  %v2206_v52 = vld [vmem:[#allocation7 + $0xe4] ss:$16 sps:$4 sm:$0xff]   ;;  %v2208_v53 = vld [vmem:[#allocation7 + $0xec] ss:$16 sps:$4 sm:$0xff]  }
  0xd8   :  { %687 = vmatprep.subr.bf16.mxu1 %v2190_v37 }
  0xd9   :  { %v2779_v57 = vsub.f32 %v2720_v8, %v130_v54  ;;  %180 = vadd.xlane.f32.xlu1 %v159_v51  ;;  %182 = vadd.xlane.f32.xlu0 %v160_v55  ;;  %v2782_v58 = vsub.f32 %v2722_v9, %v131_v56  ;;  %v2205_v51 = vld [vmem:[#allocation7 + $0xc8] ss:$16 sps:$4 sm:$0xff]   ;;  %v2210_v54 = vld [vmem:[#allocation7 + $0xe0] ss:$16 sps:$4 sm:$0xff]   ;;  %v2635_v56 = vmov 0  }
  0xda   :  { %v110_v62 = vpop.xlane.xlu0 %109  ;;  %v112_v63 = vpop.xlane.xlu1 %111  ;;  %v2211_v55 = vld [vmem:[#allocation7 + $0xe8] ss:$16 sps:$4 sm:$0xff]   ;;  %598 = vmatprep.mubr.bf16.mxu0 %v2635_v56  ;;  %711 = vmatprep.mubr.bf16.mxu1 %v2635_v56 }
  0xdb   :  { %v132_v0 = vmul.f32 0.0078125, %v110_v62  ;;  %v162_v1 = vmul.f32 %v2779_v57, %v2779_v57  ;;  %v133_v2 = vmul.f32 0.0078125, %v112_v63  ;;  %v163_v7 = vmul.f32 %v2782_v58, %v2782_v58  ;;  %688 = vmatpush1.bf16.msra.mxu1 %v2193_v39 }
  0xdc   :  { %689 = vmatprep.subr.bf16.mxu1 %v2196_v43 }
  0xdd   :  { %v2789_v5 = vsub.f32 %v2726_v10, %v132_v0  ;;  %184 = vadd.xlane.f32.xlu1 %v161_v59  ;;  %186 = vadd.xlane.f32.xlu0 %v162_v1  ;;  %v2792_v6 = vsub.f32 %v2728_v11, %v133_v2  ;;  %v2212_v59 = vld [vmem:[#allocation9 + $0x40] sm:$0xff]  }
  0xde   :  { %v114_v8 = vpop.xlane.xlu0 %113  ;;  %v116_v9 = vpop.xlane.xlu1 %115 }
  0xdf   :  { %v134_v18 = vmul.f32 0.0078125, %v114_v8  ;;  %v164_v19 = vmul.f32 %v2789_v5, %v2789_v5  ;;  %v135_v10 = vmul.f32 0.0078125, %v116_v9  ;;  %v165_v21 = vmul.f32 %v2792_v6, %v2792_v6  ;;  %690 = vmatpush1.bf16.msra.mxu1 %v2199_v45 }
  0xe0   :  { %691 = vmatprep.subr.bf16.mxu1 %v2202_v47 }
  0xe1   :  { %v2799_v20 = vsub.f32 %v2732_v12, %v134_v18  ;;  %188 = vadd.xlane.f32.xlu1 %v163_v7  ;;  %190 = vadd.xlane.f32.xlu0 %v164_v19  ;;  %v2802_v11 = vsub.f32 %v2734_v13, %v135_v10 }
  0xe2   :  { %v118_v24 = vpop.xlane.xlu0 %117  ;;  %v120_v25 = vpop.xlane.xlu1 %119 }
  0xe3   :  { %v136_v30 = vmul.f32 0.0078125, %v118_v24  ;;  %v166_v31 = vmul.f32 %v2799_v20, %v2799_v20  ;;  %v137_v12 = vmul.f32 0.0078125, %v120_v25  ;;  %v167_v35 = vmul.f32 %v2802_v11, %v2802_v11  ;;  %692 = vmatpush1.bf16.msra.mxu1 %v2205_v51 }
  0xe4   :  { %693 = vmatprep.subr.bf16.mxu1 %v2208_v53  ;;  %v2215_v53 = vld [vmem:[#allocation9 + $0x80] sm:$0xff]  }
  0xe5   :  { %v2809_v13 = vsub.f32 %v2738_v14, %v136_v30  ;;  %192 = vadd.xlane.f32.xlu1 %v165_v21  ;;  %194 = vadd.xlane.f32.xlu0 %v166_v31  ;;  %v2812_v32 = vsub.f32 %v2740_v15, %v137_v12  ;;  %v2194_v15 = vld [vmem:[#allocation7 + $0xa4] ss:$16 sps:$4 sm:$0xff]   ;;  %v2826_v30 = vld [vmem:[%s3418_s1] ss:$0 sm:$0xff] }
  0xe6   :  { %576 = vmatprep.subr.bf16.mxu0 %v2194_v15 }
  0xe7   :  { %v168_v40 = vmul.f32 %v2809_v13, %v2809_v13  ;;  %v169_v14 = vmul.f32 %v2812_v32, %v2812_v32  ;;  %577 = vmatpush1.bf16.msra.mxu0 %v2198_v44  ;;  %694 = vmatpush1.bf16.msra.mxu1 %v2211_v55 }
  0xe8   :  { %578 = vmatprep.subr.bf16.mxu0 %v2200_v46  ;;  %2089 = vmatprep.subr.bf16.mxu1 %v2213_v60  ;;  %v2217_v60 = vld [vmem:[#allocation9 + $0xc8] sm:$0xff]  }
  0xe9   :  { %196 = vadd.xlane.f32.xlu1 %v167_v35  ;;  %198 = vadd.xlane.f32.xlu0 %v168_v40 }
  0xeb   :  { %579 = vmatpush1.bf16.msra.mxu0 %v2204_v48 }
  0xec   :  { %580 = vmatprep.subr.bf16.mxu0 %v2206_v52  ;;  %v2214_v52 = vld [vmem:[#allocation9] sm:$0xff]  }
  0xed   :  { %200 = vadd.xlane.f32.xlu1 %v169_v14 }
  0xef   :  { %581 = vmatpush1.bf16.msra.mxu0 %v2210_v54 }
  0xf0   :  { %2025 = vmatprep.subr.bf16.mxu0 %v2212_v59  ;;  %v2216_v59 = vld [vmem:[#allocation9 + $0x48] sm:$0xff]  }
 0x15a   :  { %v171_v61 = vpop.xlane.xlu0 %170 }
 0x15b   :  { %v202_v62 = vmul.f32 0.0078125, %v171_v61 }
 0x15d   :  { %v218_v63 = vadd.f32 1e-05, %v202_v62 }
 0x15e   :  { %v173_v0 = vpop.xlane.xlu1 %172  ;;  %v175_v1 = vpop.xlane.xlu0 %174 }
 0x15f   :  { %2244 = vrsqrt.f32 %v218_v63  ;;  %v203_v2 = vmul.f32 0.0078125, %v173_v0  ;;  %v204_v3 = vmul.f32 0.0078125, %v175_v1  ;;  %v2218_v1 = vld [vmem:[#allocation9 + $0x8] sm:$0xff]  }
 0x161   :  { %v219_v4 = vadd.f32 1e-05, %v203_v2  ;;  %v220_v7 = vadd.f32 1e-05, %v204_v3  ;;  %v2219_v2 = vld [vmem:[#allocation9 + $0x88] sm:$0xff]  }
 0x162   :  { %v177_v8 = vpop.xlane.xlu1 %176  ;;  %v179_v9 = vpop.xlane.xlu0 %178 }
 0x163   :  { %2246 = vrsqrt.f32 %v219_v4  ;;  %v205_v16 = vmul.f32 0.0078125, %v177_v8  ;;  %v206_v18 = vmul.f32 0.0078125, %v179_v9  ;;  %v2220_v4 = vld [vmem:[#allocation9 + $0x50] sm:$0xff]  }
 0x164   :  { %2248 = vrsqrt.f32 %v220_v7  ;;  %v2221_v7 = vld [vmem:[#allocation9 + $0xd0] sm:$0xff]  }
 0x165   :  { %v221_v17 = vadd.f32 1e-05, %v205_v16  ;;  %v222_v22 = vadd.f32 1e-05, %v206_v18 }
 0x166   :  { %v181_v19 = vpop.xlane.xlu1 %180  ;;  %v183_v24 = vpop.xlane.xlu0 %182 }
 0x167   :  { %2250 = vrsqrt.f32 %v221_v17  ;;  %v207_v10 = vmul.f32 0.0078125, %v181_v19  ;;  %v208_v12 = vmul.f32 0.0078125, %v183_v24  ;;  %v2225_v24 = vld [vmem:[#allocation9 + $0xd8] sm:$0xff]  }
 0x169   :  { %v2245_v21 = vpop.eup %2244  ;;  %v223_v23 = vadd.f32 1e-05, %v207_v10  ;;  %v224_v15 = vadd.f32 1e-05, %v208_v12  ;;  %v2223_v10 = vld [vmem:[#allocation9 + $0x90] sm:$0xff]  }
 0x16a   :  { %v185_v25 = vpop.xlane.xlu1 %184  ;;  %v250_v28 = vmul.f32 %v2245_v21, %v2746_v26  ;;  %v2833_v26 = vld [vmem:[%s3419_s2] ss:$0 sm:$0xff]  ;;  %v187_v43 = vpop.xlane.xlu0 %186 }
 0x16b   :  { %2252 = vrsqrt.f32 %v223_v23  ;;  %v209_v29 = vmul.f32 0.0078125, %v185_v25  ;;  %v210_v55 = vmul.f32 0.0078125, %v187_v43  ;;  %v2224_v23 = vld [vmem:[#allocation9 + $0x58] sm:$0xff]  }
 0x16c   :  { %2254 = vrsqrt.f32 %v222_v22  ;;  %v273_v36 = vmul.f32 %v2826_v30, %v250_v28 }
 0x16d   :  { %v2247_v31 = vpop.eup %2246  ;;  %v225_v38 = vadd.f32 1e-05, %v209_v29  ;;  %v226_v3 = vadd.f32 1e-05, %v210_v55 }
 0x16e   :  { %v251_v35 = vmul.f32 %v2247_v31, %v2752_v33  ;;  %v2249_v37 = vpop.eup %2248  ;;  %v189_v39 = vpop.xlane.xlu1 %188  ;;  %v296_v44 = vadd.f32 %v2833_v26, %v273_v36  ;;  %v2227_v36 = vld [vmem:[#allocation9 + $0x98] sm:$0xff]  }
 0x16f   :  { %v252_v33 = vmul.f32 %v2249_v37, %v2748_v27  ;;  %2256 = vrsqrt.f32 %v225_v38  ;;  %v211_v47 = vmul.f32 0.0078125, %v189_v39  ;;  %v191_v8 = vpop.xlane.xlu0 %190 }
 0x170   :  { %v274_v40 = vmul.f32 %v2826_v30, %v251_v35  ;;  %2258 = vrsqrt.f32 %v224_v15  ;;  %v212_v22 = vmul.f32 0.0078125, %v191_v8  ;;  %v2226_v35 = vld [vmem:[#allocation9 + $0x18] sm:$0xff]  }
 0x171   :  { %v2251_v14 = vpop.eup %2250  ;;  %v275_v61 = vmul.f32 %v2826_v30, %v252_v33  ;;  %v227_v27 = vadd.f32 1e-05, %v211_v47 }
 0x172   :  { %v297_v45 = vadd.f32 %v2833_v26, %v274_v40  ;;  %v253_v46 = vmul.f32 %v2251_v14, %v2754_v34  ;;  %v193_v34 = vpop.xlane.xlu1 %192  ;;  %v228_v37 = vadd.f32 1e-05, %v212_v22 }
 0x173   :  { %v298_v9 = vadd.f32 %v2833_v26, %v275_v61  ;;  %2260 = vrsqrt.f32 %v227_v27  ;;  %v213_v17 = vmul.f32 0.0078125, %v193_v34  ;;  %v195_v38 = vpop.xlane.xlu0 %194 }
 0x174   :  { %v312_v48 = vpack.c.bf16 %v297_v45, %v296_v44  ;;  %v276_v51 = vmul.f32 %v2826_v30, %v253_v46  ;;  %2262 = vrsqrt.f32 %v226_v3  ;;  %v214_v44 = vmul.f32 0.0078125, %v195_v38  ;;  %v2235_v38 = vld [vmem:[#allocation9 + $0xa8] sm:$0xff]  }
 0x175   :  { %v2253_v54 = vpop.eup %2252  ;;  %v229_v28 = vadd.f32 1e-05, %v213_v17 }
 0x176   :  { %599 = vmatmul.mubr.bf16.vlgmr.msra.gmra.mrb[0].mxu0 %v312_v48  ;;  %712 = vmatmul.mubr.bf16.vlgmr.msra.gmra.mrb[0].mxu1 %v312_v48  ;;  %v2255_v62 = vpop.eup %2254  ;;  %v299_v63 = vadd.f32 %v2833_v26, %v276_v51  ;;  %v255_v0 = vmul.f32 %v2253_v54, %v2762_v42  ;;  %v2222_v42 = vld [vmem:[#allocation9 + $0x10] sm:$0xff]   ;;  %v197_v29 = vpop.xlane.xlu1 %196  ;;  %v230_v51 = vadd.f32 1e-05, %v214_v44  ;;  %v386_v44 = vlaneseq }
 0x177   :  { %608 = vmatprep.mubr.bf16.mxu0 %v2635_v56  ;;  %721 = vmatprep.mubr.bf16.mxu1 %v2635_v56  ;;  %v254_v16 = vmul.f32 %v2255_v62, %v2760_v41  ;;  %2264 = vrsqrt.f32 %v229_v28  ;;  %v215_v14 = vmul.f32 0.0078125, %v197_v29 }
 0x178   :  { %2026 = vmatpush3.bf16.msra.mxu0 %v2214_v52  ;;  %2090 = vmatpush3.bf16.msra.mxu1 %v2215_v53  ;;  %v313_v18 = vpack.c.bf16 %v299_v63, %v298_v9  ;;  %v278_v19 = vmul.f32 %v2826_v30, %v255_v0  ;;  %2266 = vrsqrt.f32 %v228_v37  ;;  %v199_v52 = vpop.xlane.xlu0 %198  ;;  %v2234_v37 = vld [vmem:[#allocation9 + $0x28] sm:$0xff]  }
 0x179   :  { %2027 = vmatprep.subr.bf16.mxu0 %v2216_v59  ;;  %2091 = vmatprep.subr.bf16.mxu1 %v2217_v60  ;;  %v2257_v21 = vpop.eup %2256  ;;  %v277_v41 = vmul.f32 %v2826_v30, %v254_v16  ;;  %v231_v46 = vadd.f32 1e-05, %v215_v14  ;;  %v216_v62 = vmul.f32 0.0078125, %v199_v52  ;;  %v2240_v14 = vld [vmem:[#allocation9 + $0x78] sm:$0xff]  }
 0x17a   :  { %v2259_v25 = vpop.eup %2258  ;;  %v301_v31 = vadd.f32 %v2833_v26, %v278_v19  ;;  %v257_v12 = vmul.f32 %v2257_v21, %v2772_v50 }
 0x17b   :  { %v300_v39 = vadd.f32 %v2833_v26, %v277_v41  ;;  %v256_v40 = vmul.f32 %v2259_v25, %v2769_v49  ;;  %v201_v49 = vpop.xlane.xlu1 %200  ;;  %2268 = vrsqrt.f32 %v231_v46  ;;  %v232_v0 = vadd.f32 1e-05, %v216_v62 }
 0x17c   :  { %2028 = vmatpush3.bf16.msra.mxu0 %v2218_v1  ;;  %2092 = vmatpush3.bf16.msra.mxu1 %v2219_v2  ;;  %v280_v43 = vmul.f32 %v2826_v30, %v257_v12  ;;  %v217_v55 = vmul.f32 0.0078125, %v201_v49  ;;  %2270 = vrsqrt.f32 %v230_v51  ;;  %v2230_v12 = vld [vmem:[#allocation9 + $0x20] sm:$0xff]  }
 0x17d   :  { %2029 = vmatprep.subr.bf16.mxu0 %v2220_v4  ;;  %2093 = vmatprep.subr.bf16.mxu1 %v2221_v7  ;;  %v314_v15 = vpack.c.bf16 %v301_v31, %v300_v39  ;;  %v2261_v50 = vpop.eup %2260  ;;  %v279_v45 = vmul.f32 %v2826_v30, %v256_v40  ;;  %v2228_v31 = vld [vmem:[#allocation9 + $0x60] sm:$0xff]   ;;  %v2238_v39 = vld [vmem:[#allocation9 + $0x30] sm:$0xff]  }
 0x17e   :  { %609 = vmatmul.mubr.bf16.gmra.mrb[4].mxu0 %v313_v18  ;;  %722 = vmatmul.mubr.bf16.gmra.mrb[4].mxu1 %v313_v18  ;;  %v2263_v33 = vpop.eup %2262  ;;  %v303_v47 = vadd.f32 %v2833_v26, %v280_v43  ;;  %v259_v48 = vmul.f32 %v2261_v50, %v2782_v58  ;;  %v233_v58 = vadd.f32 1e-05, %v217_v55  ;;  %v2239_v40 = vld [vmem:[#allocation9 + $0xb0] sm:$0xff]   ;;  %v2242_v43 = vld [vmem:[#allocation9 + $0x38] sm:$0xff]   ;;  %v384_v49 = vld [vmem:[%s3421_s4] sm:$0xf] }
 0x17f   :  { %618 = vmatprep.mubr.bf16.mxu0 %v2635_v56  ;;  %731 = vmatprep.mubr.bf16.mxu1 %v2635_v56  ;;  %v302_v53 = vadd.f32 %v2833_v26, %v279_v45  ;;  %v258_v54 = vmul.f32 %v2263_v33, %v2779_v57  ;;  %v2243_v50 = vld [vmem:[#allocation9 + $0xb8] sm:$0xff]   ;;  %v387_v45 = vshrl.u32 %v386_v44, 7 }
 0x180   :  { %2030 = vmatpush3.bf16.msra.mxu0 %v2222_v42  ;;  %2094 = vmatpush3.bf16.msra.mxu1 %v2223_v10  ;;  %v282_v60 = vmul.f32 %v2826_v30, %v259_v48  ;;  %2272 = vrsqrt.f32 %v233_v58 }
 0x181   :  { %2031 = vmatprep.subr.bf16.mxu0 %v2224_v23  ;;  %2095 = vmatprep.subr.bf16.mxu1 %v2225_v24  ;;  %v315_v59 = vpack.c.bf16 %v303_v47, %v302_v53  ;;  %v2265_v61 = vpop.eup %2264  ;;  %v281_v27 = vmul.f32 %v2826_v30, %v258_v54  ;;  %2274 = vrsqrt.f32 %v232_v0  ;;  %v388_v33 = vsub.s32 0, %v387_v45 }
 0x182   :  { %v2267_v34 = vpop.eup %2266  ;;  %v305_v57 = vadd.f32 %v2833_v26, %v282_v60  ;;  %v261_v63 = vmul.f32 %v2265_v61, %v2792_v6  ;;  %v396_v46 = vsub.s32 2, %v387_v45  ;;  %v392_v47 = vsub.s32 1, %v387_v45 }
 0x183   :  { %v304_v1 = vadd.f32 %v2833_v26, %v281_v27  ;;  %v260_v2 = vmul.f32 %v2267_v34, %v2789_v5  ;;  %v400_v48 = vsub.s32 3, %v387_v45  ;;  %v2897_v51 = vrot.slane %v384_v49, %v388_v33 }
 0x184   :  { %2032 = vmatpush3.bf16.msra.mxu0 %v2226_v35  ;;  %2096 = vmatpush3.bf16.msra.mxu1 %v2227_v36  ;;  %v284_v4 = vmul.f32 %v2826_v30, %v261_v63  ;;  %v2231_v35 = vld [vmem:[#allocation9 + $0xa0] sm:$0xff]   ;;  %v2233_v36 = vld [vmem:[#allocation9 + $0xe8] sm:$0xff]   ;;  %v2899_v52 = vrot.slane %v384_v49, %v396_v46  ;;  %v2901_v53 = vrot.slane %v384_v49, %v392_v47 }
 0x185   :  { %v316_v3 = vpack.c.bf16 %v305_v57, %v304_v1  ;;  %v2269_v7 = vpop.eup %2268  ;;  %v283_v8 = vmul.f32 %v2826_v30, %v260_v2  ;;  %2033 = vmatprep.subr.bf16.mxu0 %v2228_v31  ;;  %v2903_v54 = vrot.slane %v384_v49, %v400_v48 }
 0x186   :  { %619 = vmatmul.mubr.bf16.gmra.mrb[8].mxu0 %v314_v15  ;;  %732 = vmatmul.mubr.bf16.gmra.mrb[8].mxu1 %v314_v15  ;;  %v2271_v9 = vpop.eup %2270  ;;  %v307_v6 = vadd.f32 %v2833_v26, %v284_v4  ;;  %v263_v16 = vmul.f32 %v2269_v7, %v2802_v11  ;;  %v2241_v15 = vld [vmem:[#allocation9 + $0xf8] sm:$0xff]  }
 0x187   :  { %628 = vmatprep.mubr.bf16.mxu0 %v2635_v56  ;;  %741 = vmatprep.mubr.bf16.mxu1 %v2635_v56  ;;  %v306_v5 = vadd.f32 %v2833_v26, %v283_v8  ;;  %v262_v17 = vmul.f32 %v2271_v9, %v2799_v20 }
 0x188   :  { %v286_v19 = vmul.f32 %v2826_v30, %v263_v16  ;;  %2034 = vmatpush3.bf16.msra.mxu0 %v2230_v12 }
 0x189   :  { %v317_v18 = vpack.c.bf16 %v307_v6, %v306_v5  ;;  %v285_v10 = vmul.f32 %v2826_v30, %v262_v17 }
 0x18a   :  { %v2273_v42 = vpop.eup %2272  ;;  %v309_v22 = vadd.f32 %v2833_v26, %v286_v19 }
 0x18b   :  { %v2275_v21 = vpop.eup %2274  ;;  %v265_v11 = vmul.f32 %v2273_v42, %v2812_v32  ;;  %v308_v23 = vadd.f32 %v2833_v26, %v285_v10 }
 0x18c   :  { %v264_v20 = vmul.f32 %v2275_v21, %v2809_v13  ;;  %v2229_v13 = vld [vmem:[#allocation9 + $0xe0] sm:$0xff]  }
 0x18d   :  { %v318_v24 = vpack.c.bf16 %v309_v22, %v308_v23  ;;  %v288_v41 = vmul.f32 %v2826_v30, %v265_v11  ;;  %2097 = vmatprep.subr.bf16.mxu1 %v2229_v13 }
 0x18e   :  { %629 = vmatmul.mubr.bf16.gmra.mrb[12].mxu0 %v315_v59  ;;  %742 = vmatmul.mubr.bf16.gmra.mrb[12].mxu1 %v315_v59  ;;  %v287_v25 = vmul.f32 %v2826_v30, %v264_v20  ;;  %v2232_v30 = vld [vmem:[#allocation9 + $0x68] sm:$0xff]  }
 0x18f   :  { %638 = vmatprep.mubr.bf16.mxu0 %v2635_v56  ;;  %751 = vmatprep.mubr.bf16.mxu1 %v2635_v56  ;;  %v311_v28 = vadd.f32 %v2833_v26, %v288_v41 }
 0x190   :  { %v310_v29 = vadd.f32 %v2833_v26, %v287_v25  ;;  %2098 = vmatpush3.bf16.msra.mxu1 %v2231_v35  ;;  %2035 = vmatprep.subr.bf16.mxu0 %v2232_v30  ;;  %v2237_v26 = vld [vmem:[#allocation9 + $0xf0] sm:$0xff]  }
 0x191   :  { %2099 = vmatprep.subr.bf16.mxu1 %v2233_v36  ;;  %2036 = vmatpush3.bf16.msra.mxu0 %v2234_v37 }
 0x192   :  { %v319_v32 = vpack.c.bf16 %v311_v28, %v310_v29 }
 0x194   :  { %2100 = vmatpush3.bf16.msra.mxu1 %v2235_v38 }
 0x195   :  { %2101 = vmatprep.subr.bf16.mxu1 %v2237_v26 }
 0x196   :  { %639 = vmatmul.mubr.bf16.gmra.mrb[16].mxu0 %v316_v3  ;;  %752 = vmatmul.mubr.bf16.gmra.mrb[16].mxu1 %v316_v3 }
 0x197   :  { %648 = vmatprep.mubr.bf16.mxu0 %v2635_v56  ;;  %761 = vmatprep.mubr.bf16.mxu1 %v2635_v56 }
 0x198   :  { %2102 = vmatpush3.bf16.msra.mxu1 %v2239_v40 }
 0x199   :  { %2103 = vmatprep.subr.bf16.mxu1 %v2241_v15 }
 0x19c   :  { %2104 = vmatpush3.bf16.msra.mxu1 %v2243_v50 }
 0x19e   :  { %649 = vmatmul.mubr.bf16.gmra.mrb[20].mxu0 %v317_v18  ;;  %762 = vmatmul.mubr.bf16.gmra.mrb[20].mxu1 %v317_v18 }
 0x19f   :  { %658 = vmatprep.mubr.bf16.mxu0 %v2635_v56  ;;  %771 = vmatprep.mubr.bf16.mxu1 %v2635_v56 }
 0x1a6   :  { %659 = vmatmul.mubr.bf16.gmra.mrb[24].mxu0 %v318_v24  ;;  %772 = vmatmul.mubr.bf16.gmra.mrb[24].mxu1 %v318_v24 }
 0x1a7   :  { %668 = vmatprep.mubr.bf16.mxu0 %v2635_v56  ;;  %781 = vmatprep.mubr.bf16.mxu1 %v2635_v56  ;;  %v2236_v56 = vld [vmem:[#allocation9 + $0x70] sm:$0xff]  }
 0x1a8   :  { %2037 = vmatprep.subr.bf16.mxu0 %v2236_v56 }
 0x1a9   :  { %2038 = vmatpush3.bf16.msra.mxu0 %v2238_v39 }
 0x1aa   :  { %2039 = vmatprep.subr.bf16.mxu0 %v2240_v14 }
 0x1ad   :  { %2040 = vmatpush3.bf16.msra.mxu0 %v2242_v43 }
 0x1ae   :  { %669 = vmatmul.mubr.bf16.gmra.mrb[28].mxu0 %v319_v32  ;;  %782 = vmatmul.mubr.bf16.gmra.mrb[28].mxu1 %v319_v32 }
 0x249   :  { %v600_v55 = vpop.f32.mrb[0].mxu0  ;;  %v713_v59 = vpop.f32.mrb[0].mxu1 }
 0x24a   :  { %v2906_v60 = vadd.f32 %v600_v55, %v2897_v51  ;;  %v2909_v61 = vadd.f32 %v713_v59, %v2899_v52  ;;  %v602_v62 = vpop.f32.mrb[1].mxu0  ;;  %v715_v27 = vpop.f32.mrb[1].mxu1 }
 0x24b   :  { %v2912_v34 = vadd.f32 %v602_v62, %v2901_v53  ;;  %v2915_v58 = vadd.f32 %v715_v27, %v2903_v54  ;;  %v604_v57 = vpop.f32.mrb[2].mxu0  ;;  %v717_v63 = vpop.f32.mrb[2].mxu1 }
 0x24c   :  { %v1928_v0 = vmul.f32 -1.442695, %v2906_v60  ;;  %v1930_v1 = vmul.f32 -1.442695, %v2909_v61  ;;  %v2920_v2 = vadd.f32 %v604_v57, %v2897_v51  ;;  %v2923_v3 = vadd.f32 %v717_v63, %v2899_v52  ;;  %v606_v4 = vpop.f32.mrb[3].mxu0  ;;  %v719_v7 = vpop.f32.mrb[3].mxu1 }
 0x24d   :  { %v1929_v8 = vmul.f32 -1.442695, %v2912_v34  ;;  %v1931_v9 = vmul.f32 -1.442695, %v2915_v58  ;;  %v2928_v6 = vadd.f32 %v606_v4, %v2901_v53  ;;  %v2931_v16 = vadd.f32 %v719_v7, %v2903_v54 }
 0x24e   :  { %2276 = vpow2.f32 %v1928_v0  ;;  %v1932_v5 = vmul.f32 -1.442695, %v2920_v2  ;;  %v1934_v17 = vmul.f32 -1.442695, %v2923_v3 }
 0x24f   :  { %2278 = vpow2.f32 %v1930_v1  ;;  %v1933_v18 = vmul.f32 -1.442695, %v2928_v6  ;;  %v1935_v19 = vmul.f32 -1.442695, %v2931_v16 }
 0x250   :  { %2280 = vpow2.f32 %v1929_v8 }
 0x251   :  { %2282 = vpow2.f32 %v1931_v9  ;;  %v610_v42 = vpop.f32.mrb[4].mxu0  ;;  %v723_v10 = vpop.f32.mrb[4].mxu1 }
 0x252   :  { %2284 = vpow2.f32 %v1932_v5  ;;  %v2938_v21 = vadd.f32 %v610_v42, %v2897_v51  ;;  %v2941_v22 = vadd.f32 %v723_v10, %v2899_v52  ;;  %v612_v11 = vpop.f32.mrb[5].mxu0  ;;  %v725_v23 = vpop.f32.mrb[5].mxu1 }
 0x253   :  { %2286 = vpow2.f32 %v1934_v17  ;;  %v2944_v20 = vadd.f32 %v612_v11, %v2901_v53  ;;  %v2947_v24 = vadd.f32 %v725_v23, %v2903_v54  ;;  %v614_v41 = vpop.f32.mrb[6].mxu0  ;;  %v727_v25 = vpop.f32.mrb[6].mxu1 }
 0x254   :  { %2288 = vpow2.f32 %v1933_v18  ;;  %v1936_v28 = vmul.f32 -1.442695, %v2938_v21  ;;  %v1938_v29 = vmul.f32 -1.442695, %v2941_v22  ;;  %v2952_v32 = vadd.f32 %v614_v41, %v2897_v51  ;;  %v616_v31 = vpop.f32.mrb[7].mxu0  ;;  %v729_v13 = vpop.f32.mrb[7].mxu1 }
 0x255   :  { %2290 = vpow2.f32 %v1935_v19  ;;  %v1937_v12 = vmul.f32 -1.442695, %v2944_v20  ;;  %v1939_v35 = vmul.f32 -1.442695, %v2947_v24  ;;  %v2958_v63 = vadd.f32 %v727_v25, %v2899_v52 }
 0x256   :  { %2292 = vpow2.f32 %v1936_v28  ;;  %v1940_v30 = vmul.f32 -1.442695, %v2952_v32  ;;  %v2961_v8 = vadd.f32 %v616_v31, %v2901_v53  ;;  %v2964_v18 = vadd.f32 %v729_v13, %v2903_v54 }
 0x257   :  { %2294 = vpow2.f32 %v1938_v29  ;;  %v1942_v23 = vmul.f32 -1.442695, %v2958_v63 }
 0x258   :  { %v2277_v36 = vpop.eup %2276  ;;  %2296 = vpow2.f32 %v1937_v12 }
 0x259   :  { %v2279_v37 = vpop.eup %2278  ;;  %v984_v38 = vadd.f32 1.0, %v2277_v36  ;;  %2298 = vpow2.f32 %v1939_v35  ;;  %v620_v56 = vpop.f32.mrb[8].mxu0 }
 0x25a   :  { %v733_v26 = vpop.f32.mrb[8].mxu1  ;;  %v2281_v39 = vpop.eup %2280  ;;  %v986_v40 = vadd.f32 1.0, %v2279_v37  ;;  %2300 = vpow2.f32 %v1940_v30  ;;  %v2970_v41 = vadd.f32 %v620_v56, %v2897_v51 }
 0x25b   :  { %v622_v14 = vpop.f32.mrb[9].mxu0  ;;  %v735_v15 = vpop.f32.mrb[9].mxu1  ;;  %2302 = vrcp.f32 %v984_v38  ;;  %v985_v50 = vadd.f32 1.0, %v2281_v39  ;;  %v2977_v13 = vadd.f32 %v733_v26, %v2899_v52  ;;  %v1941_v38 = vmul.f32 -1.442695, %v2961_v8 }
 0x25c   :  { %v2283_v43 = vpop.eup %2282  ;;  %v624_v44 = vpop.f32.mrb[10].mxu0  ;;  %2304 = vrcp.f32 %v986_v40  ;;  %v2980_v12 = vadd.f32 %v622_v14, %v2901_v53  ;;  %v2988_v56 = vadd.f32 %v735_v15, %v2903_v54  ;;  %v1943_v26 = vmul.f32 -1.442695, %v2964_v18 }
 0x25d   :  { %v737_v45 = vpop.f32.mrb[10].mxu1  ;;  %v2285_v33 = vpop.eup %2284  ;;  %v987_v46 = vadd.f32 1.0, %v2283_v43  ;;  %2306 = vrcp.f32 %v985_v50  ;;  %v2994_v14 = vadd.f32 %v624_v44, %v2897_v51  ;;  %v1944_v50 = vmul.f32 -1.442695, %v2970_v41 }
 0x25e   :  { %v626_v49 = vpop.f32.mrb[11].mxu0  ;;  %v2287_v47 = vpop.eup %2286  ;;  %v988_v48 = vadd.f32 1.0, %v2285_v33  ;;  %v1945_v15 = vmul.f32 -1.442695, %v2980_v12 }
 0x25f   :  { %v739_v55 = vpop.f32.mrb[11].mxu1  ;;  %v2289_v59 = vpop.eup %2288  ;;  %2308 = vrcp.f32 %v987_v46  ;;  %v990_v62 = vadd.f32 1.0, %v2287_v47  ;;  %v1946_v46 = vmul.f32 -1.442695, %v2977_v13  ;;  %v3000_v47 = vadd.f32 %v737_v45, %v2899_v52 }
 0x260   :  { %v2291_v27 = vpop.eup %2290  ;;  %2310 = vrcp.f32 %v988_v48  ;;  %v989_v57 = vadd.f32 1.0, %v2289_v59  ;;  %v1947_v59 = vmul.f32 -1.442695, %v2988_v56  ;;  %v3004_v44 = vadd.f32 %v626_v49, %v2901_v53 }
 0x261   :  { %v2293_v0 = vpop.eup %2292  ;;  %2312 = vrcp.f32 %v990_v62  ;;  %v991_v1 = vadd.f32 1.0, %v2291_v27  ;;  %v630_v9 = vpop.f32.mrb[12].mxu0  ;;  %v3007_v62 = vadd.f32 %v739_v55, %v2903_v54 }
 0x262   :  { %v2295_v4 = vpop.eup %2294  ;;  %2314 = vrcp.f32 %v989_v57  ;;  %v992_v7 = vadd.f32 1.0, %v2293_v0  ;;  %v743_v19 = vpop.f32.mrb[12].mxu1 }
 0x263   :  { %v2297_v5 = vpop.eup %2296  ;;  %2316 = vrcp.f32 %v991_v1  ;;  %v994_v17 = vadd.f32 1.0, %v2295_v4  ;;  %v2966_v42 = vpop.f32.mrb[13].mxu0  ;;  %v1948_v4 = vmul.f32 -1.442695, %v2994_v14 }
 0x264   :  { %v2299_v10 = vpop.eup %2298  ;;  %2318 = vrcp.f32 %v992_v7  ;;  %v993_v11 = vadd.f32 1.0, %v2297_v5  ;;  %v2972_v25 = vpop.f32.mrb[13].mxu1 }
 0x265   :  { %v2974_v28 = vpop.f32.mrb[14].mxu0  ;;  %v2301_v29 = vpop.eup %2300  ;;  %2320 = vrcp.f32 %v994_v17  ;;  %v995_v31 = vadd.f32 1.0, %v2299_v10  ;;  %v3027_v10 = vadd.f32 %v630_v9, %v2897_v51 }
 0x266   :  { %v2982_v35 = vpop.f32.mrb[14].mxu1  ;;  %v2984_v30 = vpop.f32.mrb[15].mxu0  ;;  %2322 = vrcp.f32 %v993_v11  ;;  %v996_v37 = vadd.f32 1.0, %v2301_v29  ;;  %v1950_v29 = vmul.f32 -1.442695, %v3000_v47 }
 0x267   :  { %v2303_v36 = vpop.eup %2302  ;;  %v2990_v39 = vpop.f32.mrb[15].mxu1  ;;  %2324 = vrcp.f32 %v995_v31  ;;  %3427 = vst [vmem:[#allocation14_spill] sm:$0xff] %v3027_v10  ;;  %v3037_v31 = vadd.f32 %v743_v19, %v2899_v52 }
 0x268   :  { %v2305_v40 = vpop.eup %2304  ;;  %2326 = vrcp.f32 %v996_v37  ;;  %v3014_v1 = vmul.f32 %v2303_v36, %v2906_v60  ;;  %v1949_v37 = vmul.f32 -1.442695, %v3004_v44 }
 0x269   :  { %v2307_v43 = vpop.eup %2306  ;;  %2328 = vpow2.f32 %v1942_v23  ;;  %v3009_v27 = vpop.f32.mrb[16].mxu0  ;;  %v1178_v5 = vmul.f32 %v2305_v40, %v2909_v61  ;;  %3428 = vst [vmem:[#allocation15_spill] sm:$0xff] %v3037_v31  ;;  %v1951_v40 = vmul.f32 -1.442695, %v3007_v62 }
 0x26a   :  { %v2309_v33 = vpop.eup %2308  ;;  %2330 = vpow2.f32 %v1941_v38  ;;  %v3011_v57 = vpop.f32.mrb[16].mxu1 }
 0x26b   :  { %v2311_v48 = vpop.eup %2310  ;;  %2332 = vpow2.f32 %v1943_v26  ;;  %v3020_v7 = vpop.f32.mrb[17].mxu0 }
 0x26c   :  { %v2313_v0 = vpop.eup %2312  ;;  %v3017_v45 = vmul.f32 %v2311_v48, %v2920_v2  ;;  %v3022_v49 = vpop.f32.mrb[17].mxu1  ;;  %2334 = vpow2.f32 %v1944_v50 }
 0x26d   :  { %v2315_v55 = vpop.eup %2314  ;;  %v1182_v17 = vmul.f32 %v2313_v0, %v2923_v3  ;;  %v3029_v60 = vpop.f32.mrb[18].mxu0  ;;  %2336 = vpow2.f32 %v1946_v46  ;;  %v1952_v46 = vmul.f32 -1.442695, %v3027_v10 }
 0x26e   :  { %v3031_v2 = vpop.f32.mrb[18].mxu1  ;;  %v2317_v11 = vpop.eup %2316  ;;  %v1256_v23 = vpack.c.bf16 %v3017_v45, %v3014_v1  ;;  %2338 = vpow2.f32 %v1945_v15  ;;  %v1181_v19 = vmul.f32 %v2315_v55, %v2928_v6  ;;  %v1954_v15 = vmul.f32 -1.442695, %v3037_v31 }
 0x26f   :  { %v3039_v61 = vpop.f32.mrb[19].mxu0  ;;  %v3041_v3 = vpop.f32.mrb[19].mxu1  ;;  %v1258_v36 = vpack.c.bf16 %v1182_v17, %v1178_v5  ;;  %2340 = vpow2.f32 %v1947_v59  ;;  %v1183_v50 = vmul.f32 %v2317_v11, %v2931_v16  ;;  %v1177_v1 = vmul.f32 %v2307_v43, %v2912_v34 }
 0x270   :  { %v3043_v9 = vpop.eup %2318  ;;  %2342 = vpow2.f32 %v1948_v4  ;;  %v1179_v59 = vmul.f32 %v2309_v33, %v2915_v58 }
 0x271   :  { %v3046_v38 = vpop.eup %2320  ;;  %2344 = vpow2.f32 %v1950_v29  ;;  %v3059_v45 = vpop.f32.mrb[20].mxu0  ;;  %v1257_v11 = vpack.c.bf16 %v1181_v19, %v1177_v1  ;;  %v3081_v1 = vadd.f32 %v2972_v25, %v2903_v54 }
 0x272   :  { %v3049_v26 = vpop.eup %2322  ;;  %2346 = vpow2.f32 %v1949_v37  ;;  %v3061_v5 = vpop.f32.mrb[20].mxu1  ;;  %v1259_v29 = vpack.c.bf16 %v1183_v50, %v1179_v59 }
 0x273   :  { %v3054_v48 = vpop.eup %2324  ;;  %2348 = vpow2.f32 %v1951_v40  ;;  %v3063_v16 = vpop.f32.mrb[21].mxu0  ;;  %1576 = vmatprep.mubr.bf16.mxu0 %v1257_v11 }
 0x274   :  { %v2327_v0 = vpop.eup %2326  ;;  %v3065_v4 = vpop.f32.mrb[21].mxu1  ;;  %2350 = vpow2.f32 %v1952_v46  ;;  %1673 = vmatprep.mubr.bf16.mxu1 %v1259_v29  ;;  %1577 = vmatmul.mubr.bf16.vlgmr.msra.gmra.mrb[32].mxu0 %v1256_v23  ;;  %v3088_v23 = vadd.f32 %v2974_v28, %v2897_v51  ;;  %v3104_v28 = vadd.f32 %v2984_v30, %v2901_v53 }
 0x275   :  { %v2329_v6 = vpop.eup %2328  ;;  %v3067_v31 = vpop.f32.mrb[22].mxu0  ;;  %2352 = vpow2.f32 %v1954_v15  ;;  %1674 = vmatmul.mubr.bf16.vlgmr.msra.gmra.mrb[32].mxu1 %v1258_v36  ;;  %v3077_v15 = vadd.f32 %v2966_v42, %v2901_v53  ;;  %v3092_v42 = vadd.f32 %v2982_v35, %v2899_v52 }
 0x276   :  { %v2331_v55 = vpop.eup %2330  ;;  %v998_v17 = vadd.f32 1.0, %v2329_v6  ;;  %v3069_v34 = vpop.f32.mrb[22].mxu1 }
 0x277   :  { %v2333_v58 = vpop.eup %2332  ;;  %v997_v43 = vadd.f32 1.0, %v2331_v55  ;;  %v3071_v33 = vpop.f32.mrb[23].mxu0  ;;  %v3084_v55 = vmul.f32 %v2327_v0, %v2952_v32  ;;  %v3100_v32 = vmul.f32 %v3043_v9, %v2938_v21 }
 0x278   :  { %v3073_v37 = vpop.f32.mrb[23].mxu1  ;;  %v2335_v40 = vpop.eup %2334  ;;  %2354 = vrcp.f32 %v998_v17  ;;  %v999_v10 = vadd.f32 1.0, %v2333_v58 }
 0x279   :  { %v2337_v6 = vpop.eup %2336  ;;  %2356 = vrcp.f32 %v997_v43  ;;  %v1000_v19 = vadd.f32 1.0, %v2335_v40  ;;  %v3094_v11 = vpop.f32.mrb[24].mxu0  ;;  %v1260_v30 = vpack.c.bf16 %v3084_v55, %v3100_v32  ;;  %v1957_v55 = vmul.f32 -1.442695, %v3104_v28 }
 0x27a   :  { %v2339_v50 = vpop.eup %2338  ;;  %2358 = vrcp.f32 %v999_v10  ;;  %v1002_v46 = vadd.f32 1.0, %v2337_v6  ;;  %v3096_v25 = vpop.f32.mrb[24].mxu1  ;;  %v1953_v6 = vmul.f32 -1.442695, %v3077_v15  ;;  %v3131_v32 = vadd.f32 %v3009_v27, %v2897_v51 }
 0x27b   :  { %v2341_v59 = vpop.eup %2340  ;;  %2360 = vrcp.f32 %v1000_v19  ;;  %v1001_v17 = vadd.f32 1.0, %v2339_v50  ;;  %v3106_v58 = vpop.f32.mrb[25].mxu0  ;;  %v1955_v19 = vmul.f32 -1.442695, %v3081_v1  ;;  %v3146_v27 = vadd.f32 %v3022_v49, %v2903_v54 }
 0x27c   :  { %v2343_v10 = vpop.eup %2342  ;;  %2362 = vrcp.f32 %v1002_v46  ;;  %v1003_v36 = vadd.f32 1.0, %v2341_v59  ;;  %v3108_v43 = vpop.f32.mrb[25].mxu1  ;;  %v1956_v46 = vmul.f32 -1.442695, %v3088_v23  ;;  %v1187_v49 = vmul.f32 %v3054_v48, %v2947_v24 }
 0x27d   :  { %v2345_v29 = vpop.eup %2344  ;;  %2364 = vrcp.f32 %v1001_v17  ;;  %v1004_v0 = vadd.f32 1.0, %v2343_v10  ;;  %3429 = vst [vmem:[#allocation16_spill] sm:$0xff] %v3108_v43  ;;  %v3112_v50 = vpop.f32.mrb[26].mxu0  ;;  %v1960_v48 = vmul.f32 -1.442695, %v3131_v32 }
 0x27e   :  { %v2347_v35 = vpop.eup %2346  ;;  %2366 = vrcp.f32 %v1003_v36  ;;  %v1006_v40 = vadd.f32 1.0, %v2345_v29  ;;  %3430 = vst [vmem:[#allocation17_spill] sm:$0xff] %v3112_v50  ;;  %v3117_v59 = vpop.f32.mrb[26].mxu1  ;;  %v1958_v29 = vmul.f32 -1.442695, %v3092_v42  ;;  %v3124_v50 = vadd.f32 %v2990_v39, %v2903_v54 }
 0x27f   :  { %v2349_v21 = vpop.eup %2348  ;;  %2368 = vrcp.f32 %v1004_v0  ;;  %v1005_v9 = vadd.f32 1.0, %v2347_v35  ;;  %3431 = vst [vmem:[#allocation18_spill] sm:$0xff] %v3117_v59  ;;  %v3119_v17 = vpop.f32.mrb[27].mxu0  ;;  %v3139_v39 = vadd.f32 %v3020_v7, %v2901_v53  ;;  %v3153_v7 = vadd.f32 %v3029_v60, %v2897_v51 }
 0x280   :  { %3432 = vst [vmem:[#allocation19_spill] sm:$0xff] %v3119_v17  ;;  %v2351_v10 = vpop.eup %2350  ;;  %2370 = vrcp.f32 %v1006_v40  ;;  %v1007_v36 = vadd.f32 1.0, %v2349_v21  ;;  %v3126_v0 = vpop.f32.mrb[27].mxu1  ;;  %v3135_v21 = vadd.f32 %v3011_v57, %v2899_v52  ;;  %v1185_v57 = vmul.f32 %v3049_v26, %v2944_v20 }
 0x281   :  { %3433 = vst [vmem:[#allocation20_spill] sm:$0xff] %v3126_v0  ;;  %v2353_v35 = vpop.eup %2352  ;;  %2372 = vrcp.f32 %v1005_v9  ;;  %v1008_v43 = vadd.f32 1.0, %v2351_v10  ;;  %v1186_v9 = vmul.f32 %v3046_v38, %v2941_v22  ;;  %v3155_v59 = vpop.f32.mrb[28].mxu0  ;;  %v1959_v60 = vmul.f32 -1.442695, %v3124_v50 }
 0x282   :  { %v2355_v17 = vpop.eup %2354  ;;  %2374 = vrcp.f32 %v1007_v36  ;;  %v1010_v40 = vadd.f32 1.0, %v2353_v35  ;;  %v3157_v22 = vpop.f32.mrb[28].mxu1 }
 0x283   :  { %v2357_v0 = vpop.eup %2356  ;;  %v1190_v10 = vmul.f32 %v2355_v17, %v2958_v63  ;;  %2376 = vrcp.f32 %v1008_v43  ;;  %v3162_v20 = vpop.f32.mrb[29].mxu0  ;;  %v3169_v17 = vadd.f32 %v3031_v2, %v2899_v52 }
 0x284   :  { %v2359_v36 = vpop.eup %2358  ;;  %v1189_v35 = vmul.f32 %v2357_v0, %v2961_v8  ;;  %2378 = vrcp.f32 %v1010_v40  ;;  %v3164_v8 = vpop.f32.mrb[29].mxu1 }
 0x285   :  { %v2361_v63 = vpop.eup %2360  ;;  %v1191_v38 = vmul.f32 %v2359_v36, %v2964_v18  ;;  %2380 = vpow2.f32 %v1953_v6  ;;  %v1262_v43 = vpack.c.bf16 %v1190_v10, %v1186_v9  ;;  %v3171_v40 = vpop.f32.mrb[30].mxu0  ;;  %v3178_v6 = vadd.f32 %v3039_v61, %v2901_v53 }
 0x286   :  { %v2363_v26 = vpop.eup %2362  ;;  %2382 = vpow2.f32 %v1955_v19  ;;  %v1261_v0 = vpack.c.bf16 %v1189_v35, %v1185_v57  ;;  %3434 = vst [vmem:[#allocation21_spill] sm:$0xff] %v3171_v40  ;;  %v3173_v24 = vpop.f32.mrb[30].mxu1  ;;  %v1962_v36 = vmul.f32 -1.442695, %v3135_v21  ;;  %v1963_v35 = vmul.f32 -1.442695, %v3146_v27 }
 0x287   :  { %3435 = vst [vmem:[#allocation22_spill] sm:$0xff] %v3173_v24  ;;  %v2365_v18 = vpop.eup %2364  ;;  %2384 = vpow2.f32 %v1956_v46  ;;  %v1263_v19 = vpack.c.bf16 %v1191_v38, %v1187_v49  ;;  %v3180_v9 = vpop.f32.mrb[31].mxu0  ;;  %v1961_v46 = vmul.f32 -1.442695, %v3139_v39  ;;  %v1964_v24 = vmul.f32 -1.442695, %v3153_v7 }
 0x288   :  { %3436 = vst [vmem:[#allocation23_spill] sm:$0xff] %v3180_v9  ;;  %v3182_v10 = vpop.f32.mrb[31].mxu1  ;;  %v2367_v2 = vpop.eup %2366  ;;  %2386 = vpow2.f32 %v1958_v29  ;;  %1584 = vmatprep.mubr.bf16.mxu0 %v1261_v0  ;;  %v1192_v49 = vmul.f32 %v2361_v63, %v2970_v41  ;;  %v1966_v29 = vmul.f32 -1.442695, %v3169_v17  ;;  %v1965_v9 = vmul.f32 -1.442695, %v3178_v6 }
 0x289   :  { %3437 = vst [vmem:[#allocation24_spill] sm:$0xff] %v3182_v10  ;;  %v2369_v57 = vpop.eup %2368  ;;  %2388 = vpow2.f32 %v1957_v55  ;;  %1681 = vmatprep.mubr.bf16.mxu1 %v1263_v19  ;;  %1585 = vmatmul.mubr.bf16.gmra.mrb[36].mxu0 %v1260_v30  ;;  %v1194_v55 = vmul.f32 %v2363_v26, %v2977_v13  ;;  %v1193_v30 = vmul.f32 %v2365_v18, %v2980_v12 }
 0x28a   :  { %v2371_v61 = vpop.eup %2370  ;;  %v1196_v38 = vmul.f32 %v2369_v57, %v2994_v14  ;;  %2390 = vpow2.f32 %v1959_v60  ;;  %1682 = vmatmul.mubr.bf16.gmra.mrb[36].mxu1 %v1262_v43  ;;  %v1195_v63 = vmul.f32 %v2367_v2, %v2988_v56 }
 0x28b   :  { %v2373_v0 = vpop.eup %2372  ;;  %v1198_v10 = vmul.f32 %v2371_v61, %v3000_v47  ;;  %2392 = vpow2.f32 %v1960_v48 }
 0x28c   :  { %v2375_v40 = vpop.eup %2374  ;;  %v1197_v19 = vmul.f32 %v2373_v0, %v3004_v44  ;;  %2394 = vpow2.f32 %v1962_v36  ;;  %v1264_v41 = vpack.c.bf16 %v1196_v38, %v1192_v49  ;;  %v3204_v38 = vadd.f32 %v3041_v3, %v2903_v54 }
 0x28d   :  { %v3196_v14 = vpop.eup %2376  ;;  %v1199_v43 = vmul.f32 %v2375_v40, %v3007_v62  ;;  %2396 = vpow2.f32 %v1961_v46  ;;  %v1266_v13 = vpack.c.bf16 %v1198_v10, %v1194_v55  ;;  %v3220_v3 = vadd.f32 %v3065_v4, %v2903_v54 }
 0x28e   :  { %v3200_v26 = vpop.eup %2378  ;;  %2398 = vpow2.f32 %v1963_v35  ;;  %v1265_v47 = vpack.c.bf16 %v1197_v19, %v1193_v30  ;;  %v3212_v30 = vadd.f32 %v3061_v5, %v2899_v52  ;;  %v3216_v19 = vadd.f32 %v3063_v16, %v2901_v53 }
 0x28f   :  { %v2381_v60 = vpop.eup %2380  ;;  %2400 = vpow2.f32 %v1964_v24  ;;  %v1267_v48 = vpack.c.bf16 %v1199_v43, %v1195_v63  ;;  %v3228_v5 = vadd.f32 %v3069_v34, %v2899_v52  ;;  %v3232_v16 = vadd.f32 %v3071_v33, %v2901_v53 }
 0x290   :  { %v2383_v12 = vpop.eup %2382  ;;  %v1009_v18 = vadd.f32 1.0, %v2381_v60  ;;  %2402 = vpow2.f32 %v1966_v29  ;;  %1592 = vmatprep.mubr.bf16.mxu0 %v1265_v47  ;;  %v3208_v29 = vadd.f32 %v3059_v45, %v2897_v51  ;;  %v3224_v45 = vadd.f32 %v3067_v31, %v2897_v51 }
 0x291   :  { %v2385_v44 = vpop.eup %2384  ;;  %v1011_v36 = vadd.f32 1.0, %v2383_v12  ;;  %2404 = vpow2.f32 %v1965_v9  ;;  %1689 = vmatprep.mubr.bf16.mxu1 %v1267_v48  ;;  %1593 = vmatmul.mubr.bf16.gmra.mrb[40].mxu0 %v1264_v41  ;;  %v1967_v4 = vmul.f32 -1.442695, %v3204_v38 }
 0x292   :  { %v2387_v56 = vpop.eup %2386  ;;  %2406 = vrcp.f32 %v1009_v18  ;;  %v1012_v62 = vadd.f32 1.0, %v2385_v44  ;;  %1690 = vmatmul.mubr.bf16.gmra.mrb[40].mxu1 %v1266_v13  ;;  %v1968_v48 = vmul.f32 -1.442695, %v3208_v29  ;;  %v1970_v18 = vmul.f32 -1.442695, %v3212_v30 }
 0x293   :  { %v2389_v40 = vpop.eup %2388  ;;  %2408 = vrcp.f32 %v1011_v36  ;;  %v1014_v10 = vadd.f32 1.0, %v2387_v56  ;;  %v1969_v44 = vmul.f32 -1.442695, %v3216_v19  ;;  %v1971_v36 = vmul.f32 -1.442695, %v3220_v3 }
 0x294   :  { %v2391_v2 = vpop.eup %2390  ;;  %2410 = vrcp.f32 %v1012_v62  ;;  %v1013_v24 = vadd.f32 1.0, %v2389_v40  ;;  %v1972_v33 = vmul.f32 -1.442695, %v3224_v45  ;;  %v3242_v56 = vadd.f32 %v3073_v37, %v2903_v54 }
 0x295   :  { %v2393_v57 = vpop.eup %2392  ;;  %2412 = vrcp.f32 %v1014_v10  ;;  %v1015_v46 = vadd.f32 1.0, %v2391_v2  ;;  %v1974_v40 = vmul.f32 -1.442695, %v3228_v5  ;;  %v1973_v10 = vmul.f32 -1.442695, %v3232_v16 }
 0x296   :  { %v2395_v35 = vpop.eup %2394  ;;  %2414 = vrcp.f32 %v1013_v24  ;;  %v1016_v61 = vadd.f32 1.0, %v2393_v57  ;;  %v3248_v2 = vadd.f32 %v3094_v11, %v2897_v51  ;;  %v3438_v57 = vld [vmem:[#allocation14_spill] sm:$0xff]  ;;  %v3255_v37 = vadd.f32 %v3096_v25, %v2899_v52 }
 0x297   :  { %v2397_v49 = vpop.eup %2396  ;;  %2416 = vrcp.f32 %v1015_v46  ;;  %v1018_v9 = vadd.f32 1.0, %v2395_v35  ;;  %v1200_v46 = vmul.f32 %v3196_v14, %v3438_v57  ;;  %v3262_v11 = vadd.f32 %v3106_v58, %v2901_v53  ;;  %v3440_v58 = vld [vmem:[#allocation16_spill] sm:$0xff] }
 0x298   :  { %v2399_v0 = vpop.eup %2398  ;;  %2418 = vrcp.f32 %v1016_v61  ;;  %v1017_v55 = vadd.f32 1.0, %v2397_v49  ;;  %v3439_v49 = vld [vmem:[#allocation15_spill] sm:$0xff] }
 0x299   :  { %v2401_v41 = vpop.eup %2400  ;;  %2420 = vrcp.f32 %v1018_v9  ;;  %v1019_v63 = vadd.f32 1.0, %v2399_v0  ;;  %v1202_v9 = vmul.f32 %v3200_v26, %v3439_v49 }
 0x29a   :  { %v2403_v43 = vpop.eup %2402  ;;  %2422 = vrcp.f32 %v1017_v55  ;;  %v1020_v13 = vadd.f32 1.0, %v2401_v41 }
 0x29b   :  { %v2405_v47 = vpop.eup %2404  ;;  %2424 = vrcp.f32 %v1019_v63  ;;  %v1022_v60 = vadd.f32 1.0, %v2403_v43 }
 0x29c   :  { %v2407_v31 = vpop.eup %2406  ;;  %2426 = vrcp.f32 %v1020_v13  ;;  %v1021_v12 = vadd.f32 1.0, %v2405_v47  ;;  %v1975_v13 = vmul.f32 -1.442695, %v3242_v56  ;;  %v3271_v47 = vadd.f32 %v3440_v58, %v2903_v54  ;;  %v3443_v58 = vld [vmem:[#allocation19_spill] sm:$0xff] }
 0x29d   :  { %v2409_v34 = vpop.eup %2408  ;;  %2428 = vrcp.f32 %v1022_v60  ;;  %v1201_v14 = vmul.f32 %v2407_v31, %v3077_v15  ;;  %v1977_v31 = vmul.f32 -1.442695, %v3262_v11 }
 0x29e   :  { %v2411_v62 = vpop.eup %2410  ;;  %2430 = vrcp.f32 %v1021_v12  ;;  %v1203_v63 = vmul.f32 %v2409_v34, %v3081_v1  ;;  %v1978_v1 = vmul.f32 -1.442695, %v3255_v37  ;;  %v1979_v34 = vmul.f32 -1.442695, %v3271_v47 }
 0x29f   :  { %v2413_v24 = vpop.eup %2412  ;;  %v1204_v35 = vmul.f32 %v2411_v62, %v3088_v23  ;;  %2432 = vpow2.f32 %v1967_v4 }
 0x2a0   :  { %v2415_v61 = vpop.eup %2414  ;;  %v1206_v0 = vmul.f32 %v2413_v24, %v3092_v42  ;;  %2434 = vpow2.f32 %v1968_v48 }
 0x2a1   :  { %v2417_v55 = vpop.eup %2416  ;;  %v1205_v23 = vmul.f32 %v2415_v61, %v3104_v28  ;;  %2436 = vpow2.f32 %v1970_v18  ;;  %v1268_v41 = vpack.c.bf16 %v1204_v35, %v1200_v46  ;;  %v1976_v28 = vmul.f32 -1.442695, %v3248_v2 }
 0x2a2   :  { %v2419_v25 = vpop.eup %2418  ;;  %v1207_v43 = vmul.f32 %v2417_v55, %v3124_v50  ;;  %2438 = vpow2.f32 %v1969_v44  ;;  %v1270_v26 = vpack.c.bf16 %v1206_v0, %v1202_v9 }
 0x2a3   :  { %v2421_v42 = vpop.eup %2420  ;;  %2440 = vpow2.f32 %v1971_v36  ;;  %v1269_v15 = vpack.c.bf16 %v1205_v23, %v1201_v14  ;;  %v1208_v18 = vmul.f32 %v2419_v25, %v3131_v32  ;;  %v3441_v25 = vld [vmem:[#allocation17_spill] sm:$0xff] }
 0x2a4   :  { %v2423_v60 = vpop.eup %2422  ;;  %2442 = vpow2.f32 %v1972_v33  ;;  %v1271_v4 = vpack.c.bf16 %v1207_v43, %v1203_v63  ;;  %v3282_v33 = vmul.f32 %v2421_v42, %v3135_v21  ;;  %v3293_v63 = vadd.f32 %v3441_v25, %v2897_v51  ;;  %v3442_v42 = vld [vmem:[#allocation18_spill] sm:$0xff] }
 0x2a5   :  { %v3274_v48 = vpop.eup %2424  ;;  %2444 = vpow2.f32 %v1974_v40  ;;  %1600 = vmatprep.mubr.bf16.mxu0 %v1269_v15  ;;  %v3301_v15 = vadd.f32 %v3443_v58, %v2901_v53 }
 0x2a6   :  { %v2427_v50 = vpop.eup %2426  ;;  %2446 = vpow2.f32 %v1973_v10  ;;  %1697 = vmatprep.mubr.bf16.mxu1 %v1271_v4  ;;  %1601 = vmatmul.mubr.bf16.gmra.mrb[44].mxu0 %v1268_v41  ;;  %v1209_v10 = vmul.f32 %v2423_v60, %v3139_v39 }
 0x2a7   :  { %v2429_v12 = vpop.eup %2428  ;;  %v1212_v44 = vmul.f32 %v2427_v50, %v3153_v7  ;;  %2448 = vpow2.f32 %v1975_v13  ;;  %1698 = vmatmul.mubr.bf16.gmra.mrb[44].mxu1 %v1270_v26  ;;  %v3297_v13 = vadd.f32 %v3442_v42, %v2899_v52 }
 0x2a8   :  { %v2431_v36 = vpop.eup %2430  ;;  %v3285_v62 = vmul.f32 %v2429_v12, %v3169_v17  ;;  %2450 = vpow2.f32 %v1976_v28  ;;  %v1980_v12 = vmul.f32 -1.442695, %v3293_v63 }
 0x2a9   :  { %v2433_v40 = vpop.eup %2432  ;;  %v1213_v24 = vmul.f32 %v2431_v36, %v3178_v6  ;;  %2452 = vpow2.f32 %v1978_v1  ;;  %v1272_v32 = vpack.c.bf16 %v1212_v44, %v1208_v18  ;;  %v3444_v18 = vld [vmem:[#allocation20_spill] sm:$0xff] }
 0x2aa   :  { %v2435_v7 = vpop.eup %2434  ;;  %v1023_v57 = vadd.f32 1.0, %v2433_v40  ;;  %2454 = vpow2.f32 %v1977_v31  ;;  %v1274_v46 = vpack.c.bf16 %v3285_v62, %v3282_v33  ;;  %v3306_v44 = vadd.f32 %v3444_v18, %v2903_v54 }
 0x2ab   :  { %v2437_v35 = vpop.eup %2436  ;;  %v1024_v21 = vadd.f32 1.0, %v2435_v7  ;;  %2456 = vpow2.f32 %v1979_v34  ;;  %v1273_v61 = vpack.c.bf16 %v1213_v24, %v1209_v10  ;;  %v1982_v40 = vmul.f32 -1.442695, %v3297_v13 }
 0x2ac   :  { %v2439_v17 = vpop.eup %2438  ;;  %2458 = vrcp.f32 %v1023_v57  ;;  %v1026_v49 = vadd.f32 1.0, %v2437_v35  ;;  %v1981_v10 = vmul.f32 -1.442695, %v3301_v15  ;;  %v3312_v24 = vadd.f32 %v3155_v59, %v2897_v51 }
 0x2ad   :  { %v2441_v9 = vpop.eup %2440  ;;  %2460 = vrcp.f32 %v1024_v21  ;;  %v1025_v39 = vadd.f32 1.0, %v2439_v17  ;;  %1608 = vmatprep.mubr.bf16.mxu0 %v1273_v61  ;;  %v3316_v7 = vadd.f32 %v3157_v22, %v2899_v52  ;;  %v3320_v57 = vadd.f32 %v3162_v20, %v2901_v53  ;;  %v3445_v17 = vld [vmem:[#allocation21_spill] sm:$0xff] }
 0x2ae   :  { %v2443_v6 = vpop.eup %2442  ;;  %2462 = vrcp.f32 %v1026_v49  ;;  %v1027_v0 = vadd.f32 1.0, %v2441_v9  ;;  %1609 = vmatmul.mubr.bf16.gmra.mrb[48].mxu0 %v1272_v32  ;;  %v3324_v35 = vadd.f32 %v3164_v8, %v2903_v54  ;;  %v1211_v61 = vmul.f32 %v3274_v48, %v3146_v27  ;;  %v3446_v9 = vld [vmem:[#allocation22_spill] sm:$0xff]  ;;  %v3447_v27 = vld [vmem:[#allocation23_spill] sm:$0xff] }
 0x2af   :  { %v2445_v55 = vpop.eup %2444  ;;  %2464 = vrcp.f32 %v1025_v39  ;;  %v1028_v14 = vadd.f32 1.0, %v2443_v6  ;;  %v3331_v49 = vadd.f32 %v3445_v17, %v2897_v51  ;;  %v1983_v20 = vmul.f32 -1.442695, %v3306_v44 }
 0x2b0   :  { %v2447_v23 = vpop.eup %2446  ;;  %2466 = vrcp.f32 %v1027_v0  ;;  %v1030_v41 = vadd.f32 1.0, %v2445_v55  ;;  %v3336_v39 = vadd.f32 %v3446_v9, %v2899_v52  ;;  %v1984_v6 = vmul.f32 -1.442695, %v3312_v24 }
 0x2b1   :  { %v2449_v43 = vpop.eup %2448  ;;  %2468 = vrcp.f32 %v1028_v14  ;;  %v1029_v26 = vadd.f32 1.0, %v2447_v23  ;;  %v1986_v51 = vmul.f32 -1.442695, %v3316_v7  ;;  %v1985_v55 = vmul.f32 -1.442695, %v3320_v57 }
 0x2b2   :  { %v2451_v60 = vpop.eup %2450  ;;  %2470 = vrcp.f32 %v1030_v41  ;;  %v1031_v28 = vadd.f32 1.0, %v2449_v43  ;;  %v1987_v52 = vmul.f32 -1.442695, %v3324_v35  ;;  %v1988_v23 = vmul.f32 -1.442695, %v3331_v49  ;;  %v3448_v41 = vld [vmem:[#allocation24_spill] sm:$0xff] }
 0x2b3   :  { %v2453_v4 = vpop.eup %2452  ;;  %2472 = vrcp.f32 %v1029_v26  ;;  %v1032_v1 = vadd.f32 1.0, %v2451_v60  ;;  %v3349_v25 = vadd.f32 %v3448_v41, %v2903_v54  ;;  %v1990_v42 = vmul.f32 -1.442695, %v3336_v39 }
 0x2b4   :  { %v2455_v50 = vpop.eup %2454  ;;  %2474 = vrcp.f32 %v1031_v28  ;;  %v1034_v31 = vadd.f32 1.0, %v2453_v4 }
 0x2b5   :  { %v2457_v34 = vpop.eup %2456  ;;  %v1033_v36 = vadd.f32 1.0, %v2455_v50  ;;  %2476 = vrcp.f32 %v1032_v1 }
 0x2b6   :  { %v2459_v32 = vpop.eup %2458  ;;  %2478 = vrcp.f32 %v1034_v31 }
 0x2b7   :  { %v2461_v21 = vpop.eup %2460  ;;  %v1215_v59 = vmul.f32 %v2459_v32, %v3204_v38  ;;  %2480 = vrcp.f32 %v1033_v36  ;;  %v3341_v38 = vadd.f32 %v3447_v27, %v2901_v53 }
 0x2b8   :  { %v2463_v22 = vpop.eup %2462  ;;  %2482 = vpow2.f32 %v1980_v12  ;;  %v1216_v43 = vmul.f32 %v2461_v21, %v3208_v29  ;;  %v1035_v12 = vadd.f32 1.0, %v2457_v34 }
 0x2b9   :  { %v2465_v8 = vpop.eup %2464  ;;  %v1275_v48 = vpack.c.bf16 %v1215_v59, %v1211_v61  ;;  %2484 = vpow2.f32 %v1982_v40  ;;  %v1218_v60 = vmul.f32 %v2463_v22, %v3212_v30  ;;  %v1989_v54 = vmul.f32 -1.442695, %v3341_v38 }
 0x2ba   :  { %v2467_v0 = vpop.eup %2466  ;;  %2486 = vpow2.f32 %v1981_v10  ;;  %v1217_v29 = vmul.f32 %v2465_v8, %v3216_v19  ;;  %v1991_v30 = vmul.f32 -1.442695, %v3349_v25 }
 0x2bb   :  { %v2469_v14 = vpop.eup %2468  ;;  %1705 = vmatprep.mubr.bf16.mxu1 %v1275_v48  ;;  %2488 = vpow2.f32 %v1983_v20  ;;  %v1219_v50 = vmul.f32 %v2467_v0, %v3220_v3 }
 0x2bc   :  { %v2471_v53 = vpop.eup %2470  ;;  %v1220_v26 = vmul.f32 %v2469_v14, %v3224_v45  ;;  %1706 = vmatmul.mubr.bf16.gmra.mrb[48].mxu1 %v1274_v46  ;;  %2490 = vpow2.f32 %v1984_v6 }
 0x2bd   :  { %v2473_v58 = vpop.eup %2472  ;;  %v1222_v28 = vmul.f32 %v2471_v53, %v3228_v5  ;;  %2492 = vpow2.f32 %v1986_v51 }
 0x2be   :  { %v2475_v4 = vpop.eup %2474  ;;  %v1221_v45 = vmul.f32 %v2473_v58, %v3232_v16  ;;  %v1276_v1 = vpack.c.bf16 %v1220_v26, %v1216_v43  ;;  %2494 = vpow2.f32 %v1985_v55 }
 0x2bf   :  { %v1223_v33 = vmul.f32 %v2475_v4, %v3242_v56  ;;  %v1278_v62 = vpack.c.bf16 %v1222_v28, %v1218_v60  ;;  %v2477_v46 = vpop.eup %2476  ;;  %2496 = vpow2.f32 %v1987_v52 }
 0x2c0   :  { %v1277_v5 = vpack.c.bf16 %v1221_v45, %v1217_v29  ;;  %v2479_v31 = vpop.eup %2478  ;;  %2498 = vpow2.f32 %v1988_v23  ;;  %v1224_v43 = vmul.f32 %v2477_v46, %v3248_v2 }
 0x2c1   :  { %v1279_v18 = vpack.c.bf16 %v1223_v33, %v1219_v50  ;;  %v2481_v19 = vpop.eup %2480  ;;  %2500 = vpow2.f32 %v1990_v42  ;;  %v1226_v58 = vmul.f32 %v2479_v31, %v3255_v37 }
 0x2c2   :  { %1616 = vmatprep.mubr.bf16.mxu0 %v1277_v5  ;;  %v2483_v16 = vpop.eup %2482  ;;  %2502 = vpow2.f32 %v1989_v54  ;;  %v1225_v54 = vmul.f32 %v2481_v19, %v3262_v11 }
 0x2c3   :  { %1713 = vmatprep.mubr.bf16.mxu1 %v1279_v18  ;;  %1617 = vmatmul.mubr.bf16.gmra.mrb[52].mxu0 %v1276_v1  ;;  %v2485_v3 = vpop.eup %2484  ;;  %v1036_v56 = vadd.f32 1.0, %v2483_v16  ;;  %2504 = vpow2.f32 %v1991_v30 }
 0x2c4   :  { %1714 = vmatmul.mubr.bf16.gmra.mrb[52].mxu1 %v1278_v62  ;;  %v2487_v36 = vpop.eup %2486  ;;  %2506 = vrcp.f32 %v1035_v12  ;;  %v1038_v40 = vadd.f32 1.0, %v2485_v3 }
 0x2c5   :  { %v2489_v10 = vpop.eup %2488  ;;  %2508 = vrcp.f32 %v1036_v56  ;;  %v1037_v32 = vadd.f32 1.0, %v2487_v36 }
 0x2c6   :  { %v2491_v34 = vpop.eup %2490  ;;  %2510 = vrcp.f32 %v1038_v40  ;;  %v1039_v21 = vadd.f32 1.0, %v2489_v10 }
 0x2c7   :  { %v2493_v61 = vpop.eup %2492  ;;  %2512 = vrcp.f32 %v1037_v32  ;;  %v1040_v59 = vadd.f32 1.0, %v2491_v34 }
 0x2c8   :  { %v2495_v17 = vpop.eup %2494  ;;  %2514 = vrcp.f32 %v1039_v21  ;;  %v1042_v22 = vadd.f32 1.0, %v2493_v61 }
 0x2c9   :  { %v2497_v20 = vpop.eup %2496  ;;  %2516 = vrcp.f32 %v1040_v59  ;;  %v1041_v9 = vadd.f32 1.0, %v2495_v17 }
 0x2ca   :  { %v2499_v8 = vpop.eup %2498  ;;  %2518 = vrcp.f32 %v1042_v22  ;;  %v1043_v6 = vadd.f32 1.0, %v2497_v20  ;;  %v1773_v20 = vld [vmem:[#allocation4] sm:$0xff] }
 0x2cb   :  { %v2501_v27 = vpop.eup %2500  ;;  %2520 = vrcp.f32 %v1041_v9  ;;  %v1044_v48 = vadd.f32 1.0, %v2499_v8 }
 0x2cc   :  { %v2503_v0 = vpop.eup %2502  ;;  %2522 = vrcp.f32 %v1043_v6  ;;  %v1046_v51 = vadd.f32 1.0, %v2501_v27  ;;  %v1774_v6 = vld [vmem:[#allocation4 + $0x8] sm:$0xff] }
 0x2cd   :  { %v2505_v55 = vpop.eup %2504  ;;  %2524 = vrcp.f32 %v1044_v48  ;;  %v1045_v14 = vadd.f32 1.0, %v2503_v0 }
 0x2ce   :  { %v2507_v52 = vpop.eup %2506  ;;  %2526 = vrcp.f32 %v1046_v51  ;;  %v1047_v23 = vadd.f32 1.0, %v2505_v55 }
 0x2cf   :  { %v2509_v41 = vpop.eup %2508  ;;  %2528 = vrcp.f32 %v1045_v14  ;;  %v1227_v1 = vmul.f32 %v2507_v52, %v3271_v47 }
 0x2d0   :  { %v2511_v53 = vpop.eup %2510  ;;  %v1228_v26 = vmul.f32 %v2509_v41, %v3293_v63  ;;  %2530 = vrcp.f32 %v1047_v23 }
 0x2d1   :  { %v2513_v42 = vpop.eup %2512  ;;  %v1230_v60 = vmul.f32 %v2511_v53, %v3297_v13 }
 0x2d2   :  { %v2515_v28 = vpop.eup %2514  ;;  %v1229_v4 = vmul.f32 %v2513_v42, %v3301_v15  ;;  %v1280_v29 = vpack.c.bf16 %v1228_v26, %v1224_v43 }
 0x2d3   :  { %v2517_v45 = vpop.eup %2516  ;;  %v1231_v50 = vmul.f32 %v2515_v28, %v3306_v44  ;;  %v1282_v2 = vpack.c.bf16 %v1230_v60, %v1226_v58 }
 0x2d4   :  { %v2519_v33 = vpop.eup %2518  ;;  %v1281_v63 = vpack.c.bf16 %v1229_v4, %v1225_v54  ;;  %v1232_v11 = vmul.f32 %v2517_v45, %v3312_v24 }
 0x2d5   :  { %v2521_v62 = vpop.eup %2520  ;;  %v1283_v46 = vpack.c.bf16 %v1231_v50, %v1227_v1  ;;  %v1234_v47 = vmul.f32 %v2519_v33, %v3316_v7 }
 0x2d6   :  { %v2523_v30 = vpop.eup %2522  ;;  %1624 = vmatprep.mubr.bf16.mxu0 %v1281_v63  ;;  %v1233_v12 = vmul.f32 %v2521_v62, %v3320_v57  ;;  %v1776_v63 = vld [vmem:[#allocation4 + $0x18] sm:$0xff] }
 0x2d7   :  { %v2525_v37 = vpop.eup %2524  ;;  %1721 = vmatprep.mubr.bf16.mxu1 %v1283_v46  ;;  %1625 = vmatmul.mubr.bf16.gmra.mrb[56].mxu0 %v1280_v29  ;;  %v1235_v16 = vmul.f32 %v2523_v30, %v3324_v35  ;;  %v3384_v35 = vld [vmem:[%s3423_s6] ss:$0 sm:$0xff]  ;;  %v1775_v29 = vld [vmem:[#allocation4 + $0x10] sm:$0xff]  ;;  %s2636_s6 = smov [#allocation10]  }
 0x2d8   :  { %v2527_v13 = vpop.eup %2526  ;;  %v1236_v15 = vmul.f32 %v2525_v37, %v3331_v49  ;;  %1722 = vmatmul.mubr.bf16.gmra.mrb[56].mxu1 %v1282_v2  ;;  %s1881_s22 = sshll.u32 %s2636_s6, 4  ;;  %s1882_s22 = int_to_ptr.vmem [resolvable:$true] %s1881_s22 }
 0x2d9   :  { %v2529_v5 = vpop.eup %2528  ;;  %v1238_v44 = vmul.f32 %v2527_v13, %v3336_v39  ;;  %s2598_s23 = scalar_lea.vmem %s1882_s22, 2048  ;;  %p2603_p11 = scmp.lt.s32.totalorder %s1882_s22, %s1882_s22 }
 0x2da   :  { %v2531_v31 = vpop.eup %2530  ;;  %v1237_v18 = vmul.f32 %v2529_v5, %v3341_v38  ;;  %v1284_v19 = vpack.c.bf16 %v1236_v15, %v1232_v11  ;;  %p2599_p10 = scmp.ne.s32.totalorder %s1882_s22, %s2598_s23  ;;  %p2604_p12 = scmp.lt.s32.totalorder %s2598_s23, %s2598_s23 }
 0x2db   :  { %v1239_v3 = vmul.f32 %v2531_v31, %v3349_v25  ;;  %v1286_v56 = vpack.c.bf16 %v1238_v44, %v1234_v47 }
 0x2dc   :  { %v1285_v24 = vpack.c.bf16 %v1237_v18, %v1233_v12  ;;  %p2605_p13 = por %p2604_p12, %p2603_p11 }
 0x2dd   :  { %v1287_v36 = vpack.c.bf16 %v1239_v3, %v1235_v16  ;;  %v1777_v3 = vld [vmem:[#allocation4 + $0x20] sm:$0xff] }
 0x2de   :  { %1632 = vmatprep.mubr.bf16.mxu0 %v1285_v24  ;;  %p2606_p0 = pnand %p2605_p13, %p2599_p10 }
 0x2df   :  { %1729 = vmatprep.mubr.bf16.mxu1 %v1287_v36  ;;  %1633 = vmatmul.mubr.bf16.gmra.mrb[60].mxu0 %v1284_v19  ;;  %v1778_v36 = vld [vmem:[#allocation4 + $0x28] sm:$0xff] }
 0x2e0   :  { %1730 = vmatmul.mubr.bf16.gmra.mrb[60].mxu1 %v1286_v56 }
 0x347   :  { %v2041_v7 = vpop.f32.mrb[32].mxu0 }
 0x348   :  { %v2105_v49 = vpop.f32.mrb[32].mxu1  ;;  %v2042_v39 = vpop.f32.mrb[33].mxu0 }
 0x349   :  { %v2106_v40 = vpop.f32.mrb[33].mxu1  ;;  %v2043_v10 = vadd.f32 %v2042_v39, %v2041_v7  ;;  %v2044_v32 = vpop.f32.mrb[34].mxu0 }
 0x34a   :  { %v2107_v57 = vadd.f32 %v2106_v40, %v2105_v49  ;;  %v2108_v38 = vpop.f32.mrb[34].mxu1  ;;  %v2045_v25 = vpop.f32.mrb[35].mxu0 }
 0x34b   :  { %v2109_v34 = vpop.f32.mrb[35].mxu1  ;;  %v2046_v61 = vadd.f32 %v2045_v25, %v2044_v32 }
 0x34c   :  { %v1676_v21 = vadd.f32 %v2107_v57, %v2043_v10  ;;  %v2110_v59 = vadd.f32 %v2109_v34, %v2108_v38 }
 0x34e   :  { %v1812_v17 = vadd.f32 %v3384_v35, %v1676_v21  ;;  %v1679_v22 = vadd.f32 %v2110_v59, %v2046_v61 }
 0x350   :  { %v1828_v9 = vmul.f32 0.5, %v1812_v17  ;;  %v1813_v8 = vadd.f32 %v3384_v35, %v1679_v22 }
 0x352   :  { %v1844_v27 = vadd.f32 %v1828_v9, %v1773_v20  ;;  %v1829_v48 = vmul.f32 0.5, %v1813_v8 }
 0x354   :  { %1860 = vst [vmem:[#allocation10] sm:$0xff] %v1844_v27  ;;  %v1845_v0 = vadd.f32 %v1829_v48, %v1774_v6  ;;  %v1779_v6 = vld [vmem:[#allocation4 + $0x30] sm:$0xff] }
 0x356   :  { %1861 = vst [vmem:[#allocation10 + $0x8] sm:$0xff] %v1845_v0 }
 0x35c   :  { %v2047_v51 = vpop.f32.mrb[36].mxu0 }
 0x35d   :  { %v2111_v55 = vpop.f32.mrb[36].mxu1  ;;  %v2048_v14 = vpop.f32.mrb[37].mxu0 }
 0x35e   :  { %v2049_v52 = vadd.f32 %v2048_v14, %v2047_v51  ;;  %v2112_v23 = vpop.f32.mrb[37].mxu1  ;;  %v2050_v41 = vpop.f32.mrb[38].mxu0 }
 0x35f   :  { %v2113_v53 = vadd.f32 %v2112_v23, %v2111_v55  ;;  %v2114_v43 = vpop.f32.mrb[38].mxu1  ;;  %v2051_v26 = vpop.f32.mrb[39].mxu0  ;;  %v1780_v55 = vld [vmem:[#allocation4 + $0x38] sm:$0xff] }
 0x360   :  { %v2052_v42 = vadd.f32 %v2051_v26, %v2050_v41  ;;  %v2115_v58 = vpop.f32.mrb[39].mxu1 }
 0x361   :  { %v1684_v60 = vadd.f32 %v2113_v53, %v2049_v52  ;;  %v2116_v28 = vadd.f32 %v2115_v58, %v2114_v43 }
 0x363   :  { %v1814_v54 = vadd.f32 %v3384_v35, %v1684_v60  ;;  %v1687_v4 = vadd.f32 %v2116_v28, %v2052_v42 }
 0x364   :  { %v2053_v45 = vpop.f32.mrb[40].mxu0 }
 0x365   :  { %v1830_v1 = vmul.f32 0.5, %v1814_v54  ;;  %v1815_v50 = vadd.f32 %v3384_v35, %v1687_v4  ;;  %v2117_v2 = vpop.f32.mrb[40].mxu1  ;;  %v2054_v33 = vpop.f32.mrb[41].mxu0 }
 0x366   :  { %v2055_v62 = vadd.f32 %v2054_v33, %v2053_v45  ;;  %v2118_v46 = vpop.f32.mrb[41].mxu1  ;;  %v2056_v30 = vpop.f32.mrb[42].mxu0 }
 0x367   :  { %v1846_v37 = vadd.f32 %v1830_v1, %v1775_v29  ;;  %v1831_v13 = vmul.f32 0.5, %v1815_v50  ;;  %v2119_v11 = vadd.f32 %v2118_v46, %v2117_v2  ;;  %v2120_v15 = vpop.f32.mrb[42].mxu1  ;;  %v2057_v5 = vpop.f32.mrb[43].mxu0  ;;  %v1781_v50 = vld [vmem:[#allocation4 + $0x40] sm:$0xff] }
 0x368   :  { %v2058_v47 = vadd.f32 %v2057_v5, %v2056_v30  ;;  %v2121_v44 = vpop.f32.mrb[43].mxu1  ;;  %v1782_v30 = vld [vmem:[#allocation4 + $0x48] sm:$0xff] }
 0x369   :  { %1862 = vst [vmem:[#allocation10 + $0x10] sm:$0xff] %v1846_v37  ;;  %v1847_v31 = vadd.f32 %v1831_v13, %v1776_v63  ;;  %v1692_v12 = vadd.f32 %v2119_v11, %v2055_v62  ;;  %v2122_v18 = vadd.f32 %v2121_v44, %v2120_v15 }
 0x36b   :  { %1863 = vst [vmem:[#allocation10 + $0x18] sm:$0xff] %v1847_v31  ;;  %v1816_v19 = vadd.f32 %v3384_v35, %v1692_v12  ;;  %v1695_v16 = vadd.f32 %v2122_v18, %v2058_v47 }
 0x36d   :  { %v1832_v56 = vmul.f32 0.5, %v1816_v19  ;;  %v1817_v24 = vadd.f32 %v3384_v35, %v1695_v16 }
 0x36f   :  { %v1848_v7 = vadd.f32 %v1832_v56, %v1777_v3  ;;  %v1833_v49 = vmul.f32 0.5, %v1817_v24 }
 0x371   :  { %1864 = vst [vmem:[#allocation10 + $0x20] sm:$0xff] %v1848_v7  ;;  %v1849_v39 = vadd.f32 %v1833_v49, %v1778_v36  ;;  %v1783_v36 = vld [vmem:[#allocation4 + $0x50] sm:$0xff] }
 0x373   :  { %1865 = vst [vmem:[#allocation10 + $0x28] sm:$0xff] %v1849_v39  ;;  %v1784_v39 = vld [vmem:[#allocation4 + $0x58] sm:$0xff] }
 0x379   :  { %v2059_v40 = vpop.f32.mrb[44].mxu0 }
 0x37a   :  { %v2123_v10 = vpop.f32.mrb[44].mxu1  ;;  %v2060_v57 = vpop.f32.mrb[45].mxu0 }
 0x37b   :  { %v2061_v32 = vadd.f32 %v2060_v57, %v2059_v40  ;;  %v2124_v38 = vpop.f32.mrb[45].mxu1  ;;  %v2062_v25 = vpop.f32.mrb[46].mxu0 }
 0x37c   :  { %v2125_v34 = vadd.f32 %v2124_v38, %v2123_v10  ;;  %v2126_v21 = vpop.f32.mrb[46].mxu1  ;;  %v2063_v61 = vpop.f32.mrb[47].mxu0 }
 0x37d   :  { %v2064_v59 = vadd.f32 %v2063_v61, %v2062_v25  ;;  %v2127_v17 = vpop.f32.mrb[47].mxu1 }
 0x37e   :  { %v1700_v22 = vadd.f32 %v2125_v34, %v2061_v32  ;;  %v2128_v20 = vadd.f32 %v2127_v17, %v2126_v21 }
 0x380   :  { %v1818_v9 = vadd.f32 %v3384_v35, %v1700_v22  ;;  %v1703_v8 = vadd.f32 %v2128_v20, %v2064_v59 }
 0x381   :  { %v2065_v27 = vpop.f32.mrb[48].mxu0 }
 0x382   :  { %v1834_v48 = vmul.f32 0.5, %v1818_v9  ;;  %v1819_v0 = vadd.f32 %v3384_v35, %v1703_v8  ;;  %v2066_v51 = vpop.f32.mrb[49].mxu0 }
 0x383   :  { %v2067_v14 = vadd.f32 %v2066_v51, %v2065_v27  ;;  %v2068_v52 = vpop.f32.mrb[50].mxu0 }
 0x384   :  { %v1850_v23 = vadd.f32 %v1834_v48, %v1779_v6  ;;  %v1835_v41 = vmul.f32 0.5, %v1819_v0  ;;  %v2069_v53 = vpop.f32.mrb[51].mxu0  ;;  %v1785_v0 = vld [vmem:[#allocation4 + $0x60] sm:$0xff] }
 0x385   :  { %v2070_v43 = vadd.f32 %v2069_v53, %v2068_v52 }
 0x386   :  { %1866 = vst [vmem:[#allocation10 + $0x30] sm:$0xff] %v1850_v23  ;;  %v1851_v26 = vadd.f32 %v1835_v41, %v1780_v55  ;;  %v1786_v41 = vld [vmem:[#allocation4 + $0x68] sm:$0xff] }
 0x388   :  { %1867 = vst [vmem:[#allocation10 + $0x38] sm:$0xff] %v1851_v26 }
 0x38f   :  { %v2129_v42 = vpop.f32.mrb[48].mxu1 }
 0x390   :  { %v2130_v58 = vpop.f32.mrb[49].mxu1 }
 0x391   :  { %v2131_v60 = vadd.f32 %v2130_v58, %v2129_v42  ;;  %v2132_v28 = vpop.f32.mrb[50].mxu1 }
 0x392   :  { %v2133_v54 = vpop.f32.mrb[51].mxu1 }
 0x393   :  { %v1708_v4 = vadd.f32 %v2131_v60, %v2067_v14  ;;  %v2134_v29 = vadd.f32 %v2133_v54, %v2132_v28 }
 0x395   :  { %v1820_v45 = vadd.f32 %v3384_v35, %v1708_v4  ;;  %v1711_v1 = vadd.f32 %v2134_v29, %v2070_v43 }
 0x396   :  { %v2071_v2 = vpop.f32.mrb[52].mxu0 }
 0x397   :  { %v1836_v33 = vmul.f32 0.5, %v1820_v45  ;;  %v1821_v63 = vadd.f32 %v3384_v35, %v1711_v1  ;;  %v2135_v62 = vpop.f32.mrb[52].mxu1  ;;  %v2072_v46 = vpop.f32.mrb[53].mxu0 }
 0x398   :  { %v2073_v37 = vadd.f32 %v2072_v46, %v2071_v2  ;;  %v2136_v13 = vpop.f32.mrb[53].mxu1  ;;  %v2074_v11 = vpop.f32.mrb[54].mxu0 }
 0x399   :  { %v1852_v15 = vadd.f32 %v1836_v33, %v1781_v50  ;;  %v1837_v5 = vmul.f32 0.5, %v1821_v63  ;;  %v2137_v47 = vadd.f32 %v2136_v13, %v2135_v62  ;;  %v2138_v44 = vpop.f32.mrb[54].mxu1  ;;  %v2075_v31 = vpop.f32.mrb[55].mxu0  ;;  %v1787_v63 = vld [vmem:[#allocation4 + $0x70] sm:$0xff] }
 0x39a   :  { %v2076_v12 = vadd.f32 %v2075_v31, %v2074_v11  ;;  %v2139_v18 = vpop.f32.mrb[55].mxu1 }
 0x39b   :  { %1868 = vst [vmem:[#allocation10 + $0x40] sm:$0xff] %v1852_v15  ;;  %v1853_v19 = vadd.f32 %v1837_v5, %v1782_v30  ;;  %v1716_v16 = vadd.f32 %v2137_v47, %v2073_v37  ;;  %v2140_v3 = vadd.f32 %v2139_v18, %v2138_v44  ;;  %v1788_v30 = vld [vmem:[#allocation4 + $0x78] sm:$0xff] }
 0x39d   :  { %1869 = vst [vmem:[#allocation10 + $0x48] sm:$0xff] %v1853_v19  ;;  %v1822_v56 = vadd.f32 %v3384_v35, %v1716_v16  ;;  %v1719_v24 = vadd.f32 %v2140_v3, %v2076_v12 }
 0x39f   :  { %v1838_v7 = vmul.f32 0.5, %v1822_v56  ;;  %v1823_v49 = vadd.f32 %v3384_v35, %v1719_v24 }
 0x3a1   :  { %v1854_v40 = vadd.f32 %v1838_v7, %v1783_v36  ;;  %v1839_v10 = vmul.f32 0.5, %v1823_v49 }
 0x3a3   :  { %1870 = vst [vmem:[#allocation10 + $0x50] sm:$0xff] %v1854_v40  ;;  %v1855_v57 = vadd.f32 %v1839_v10, %v1784_v39 }
 0x3a5   :  { %1871 = vst [vmem:[#allocation10 + $0x58] sm:$0xff] %v1855_v57 }
 0x3aa   :  { %v2077_v32 = vpop.f32.mrb[56].mxu0 }
 0x3ab   :  { %v2141_v38 = vpop.f32.mrb[56].mxu1  ;;  %v2078_v25 = vpop.f32.mrb[57].mxu0 }
 0x3ac   :  { %v2079_v34 = vadd.f32 %v2078_v25, %v2077_v32  ;;  %v2142_v21 = vpop.f32.mrb[57].mxu1  ;;  %v2080_v61 = vpop.f32.mrb[58].mxu0 }
 0x3ad   :  { %v2143_v59 = vadd.f32 %v2142_v21, %v2141_v38  ;;  %v2144_v17 = vpop.f32.mrb[58].mxu1  ;;  %v2081_v22 = vpop.f32.mrb[59].mxu0 }
 0x3ae   :  { %v2082_v20 = vadd.f32 %v2081_v22, %v2080_v61  ;;  %v2145_v9 = vpop.f32.mrb[59].mxu1 }
 0x3af   :  { %v1724_v8 = vadd.f32 %v2143_v59, %v2079_v34  ;;  %v2146_v6 = vadd.f32 %v2145_v9, %v2144_v17 }
 0x3b1   :  { %v1824_v27 = vadd.f32 %v3384_v35, %v1724_v8  ;;  %v1727_v48 = vadd.f32 %v2146_v6, %v2082_v20 }
 0x3b2   :  { %v2083_v51 = vpop.f32.mrb[60].mxu0 }
 0x3b3   :  { %v1840_v55 = vmul.f32 0.5, %v1824_v27  ;;  %v1825_v14 = vadd.f32 %v3384_v35, %v1727_v48  ;;  %v2147_v52 = vpop.f32.mrb[60].mxu1  ;;  %v2084_v23 = vpop.f32.mrb[61].mxu0 }
 0x3b4   :  { %v2085_v53 = vadd.f32 %v2084_v23, %v2083_v51  ;;  %v2148_v43 = vpop.f32.mrb[61].mxu1  ;;  %v2086_v26 = vpop.f32.mrb[62].mxu0 }
 0x3b5   :  { %v1856_v42 = vadd.f32 %v1840_v55, %v1785_v0  ;;  %v1841_v58 = vmul.f32 0.5, %v1825_v14  ;;  %v2149_v60 = vadd.f32 %v2148_v43, %v2147_v52  ;;  %v2150_v28 = vpop.f32.mrb[62].mxu1  ;;  %v2087_v54 = vpop.f32.mrb[63].mxu0 }
 0x3b6   :  { %v2088_v4 = vadd.f32 %v2087_v54, %v2086_v26  ;;  %v2151_v29 = vpop.f32.mrb[63].mxu1 }
 0x3b7   :  { %1872 = vst [vmem:[#allocation10 + $0x60] sm:$0xff] %v1856_v42  ;;  %v1857_v45 = vadd.f32 %v1841_v58, %v1786_v41  ;;  %v1732_v1 = vadd.f32 %v2149_v60, %v2085_v53  ;;  %v2152_v50 = vadd.f32 %v2151_v29, %v2150_v28 }
 0x3b9   :  { %1873 = vst [vmem:[#allocation10 + $0x68] sm:$0xff] %v1857_v45  ;;  %v1826_v2 = vadd.f32 %v3384_v35, %v1732_v1  ;;  %v1735_v33 = vadd.f32 %v2152_v50, %v2088_v4 }
 0x3bb   :  { %v1842_v62 = vmul.f32 0.5, %v1826_v2  ;;  %v1827_v46 = vadd.f32 %v3384_v35, %v1735_v33 }
 0x3bd   :  { %v1858_v37 = vadd.f32 %v1842_v62, %v1787_v63  ;;  %v1843_v13 = vmul.f32 0.5, %v1827_v46 }
 0x3bf   :  { %1874 = vst [vmem:[#allocation10 + $0x70] sm:$0xff] %v1858_v37  ;;  %v1859_v11 = vadd.f32 %v1843_v13, %v1788_v30 }
 0x3c1   :  { %1875 = vst [vmem:[#allocation10 + $0x78] sm:$0xff] %v1859_v11 }
 0x3c2   :  { %2609 = shalt.err (!%p2606_p0)
}
 0x3c3   :  { %s2610_s27 = scalar_lea.hbm %s3424_s7, 2048 }
 0x3c4   :  { %p2611_p1 = scmp.ne.s32.totalorder %s3424_s7, %s2610_s27  ;;  %p2614_p2 = scmp.lt.u32.totalorder %s2610_s27, %s3424_s7 }
 0x3c6   :  { %p2616_p3 = pnand %p2614_p2, %p2611_p1 }
 0x3c8   :  { %2619 = shalt.err (!%p2616_p3)
}
 0x3c9   :  { %1887 = dma.vmem_to_hbm [thread:$0]  %s1882_s22, 2048, %s3424_s7, [#allocation6], %s2630_s3, %s2630_s3, %s2631_s25  }
 0x3ca   :  { %2624 = dma.done.wait [#allocation6], 2048  }
 0x3cb   :  { %2625 = vsyncadd [#allocation6], 4294965248 }
 0x3cc   :  { %1891 = vsyncpa [#allocation5], 1 }
 0x3cd   :  { %1892 = vsyncpa [#allocation8], 1 }
 0x3ce   :  { %1893 = vsyncpa [#allocation6], 1 }

</bundles_post_ra>
